<compile_context>
chip_gen: v6e
topology: v6e:2x2x1
jax: 0.10.0
libtpu: 0.0.40
codegen_flags: <defaults>
</compile_context>

<pallas_src>
import numpy as np
import jax
import jax.numpy as jnp
from jax import lax
from jax.experimental import pallas as pl
from jax.experimental.pallas import tpu as pltpu

NUM_HEADS = 4
LN_EPS = 1e-5


def attention_block_kernel(x_ref, wqkv_ref, bqkv_ref, wo_ref, bo_ref,
                           g_ref, beta_ref, mh_ref, mht_ref, out_ref, qkv_ref):
    # x_ref block: (S=B, C, TL) f32 -- channels on sublanes, L-tile on lanes.
    S, C, TL = x_ref.shape
    H = NUM_HEADS
    W = S * TL                                   # lane width of the fused slabs

    # ---- ONE fused QKV matmul over all S positions (lane-concatenated slab) ------
    # 1/sqrt(Dh) is already folded into the q rows of wqkv/bqkv (wrapper-side).
    x_slab = jnp.concatenate([x_ref[s].astype(jnp.bfloat16) for s in range(S)],
                             axis=1)                                        # (C, W) bf16
    qkv_ref[...] = jnp.dot(wqkv_ref[...], x_slab,
                           preferred_element_type=jnp.float32) + bqkv_ref[...]  # (3C, W) f32

    # ---- scores: ONE batched head-selector matmul over all S*S (q,k) pairs -------
    qk_parts = []
    for s in range(S):
        q_s = qkv_ref[0:C, s * TL:(s + 1) * TL]                             # (C, TL) f32
        for t in range(S):
            k_t = qkv_ref[C:2 * C, t * TL:(t + 1) * TL]                     # (C, TL) f32
            qk_parts.append((q_s * k_t).astype(jnp.bfloat16))
    qk_all = jnp.concatenate(qk_parts, axis=1)                              # (C, S*S*TL) bf16
    sc_all = jnp.dot(mh_ref[...], qk_all,
                     preferred_element_type=jnp.float32)                    # (H, S*S*TL) f32

    # ---- softmax over t (length S) at the (H, TL) level; normalize pre-broadcast --
    p_parts = []
    for s in range(S):
        sc = [sc_all[:, (s * S + t) * TL:(s * S + t + 1) * TL] for t in range(S)]
        m = sc[0]
        for t in range(1, S):
            m = jnp.maximum(m, sc[t])
        e = [jnp.exp(sc[t] - m) for t in range(S)]                          # EUP
        denom = e[0]
        for t in range(1, S):
            denom = denom + e[t]
        inv = pl.reciprocal(denom, approx=True)                             # EUP
        for t in range(S):
            p_parts.append((e[t] * inv).astype(jnp.bfloat16))               # (H, TL)

    # ---- ONE batched head-broadcast matmul, weighted sum over t ------------------
    p_all = jnp.concatenate(p_parts, axis=1)                                # (H, S*S*TL) bf16
    b_all = jnp.dot(mht_ref[...], p_all,
                    preferred_element_type=jnp.float32)                     # (C, S*S*TL) f32

    ctx_parts = []
    for s in range(S):
        ctx = (b_all[:, (s * S) * TL:(s * S + 1) * TL]
               * qkv_ref[2 * C:3 * C, 0:TL])
        for t in range(1, S):
            ctx = ctx + (b_all[:, (s * S + t) * TL:(s * S + t + 1) * TL]
                         * qkv_ref[2 * C:3 * C, t * TL:(t + 1) * TL])
        ctx_parts.append(ctx.astype(jnp.bfloat16))
    ctx_slab = jnp.concatenate(ctx_parts, axis=1)                           # (C, W) bf16

    # ---- ONE out-projection matmul over the slab ---------------------------------
    attn_slab = jnp.dot(wo_ref[...], ctx_slab,
                        preferred_element_type=jnp.float32) + bo_ref[...]   # (C, W) f32

    # ---- residual (re-read from x_ref) + LayerNorm over channels -----------------
    gamma = jnp.broadcast_to(g_ref[...], (C, TL))                           # hoisted
    beta = jnp.broadcast_to(beta_ref[...], (C, TL))
    for s in range(S):
        z = x_ref[s] + attn_slab[:, s * TL:(s + 1) * TL]
        mean = jnp.mean(z, axis=0, keepdims=True)                           # (1, TL)
        var = jnp.mean((z - mean) ** 2, axis=0, keepdims=True)
        zn = (z - mean) * lax.rsqrt(var + LN_EPS)
        out_ref[s] = zn * gamma + beta


def _num_tensorcores():
    """2 on v7x-class chips (2 TCs/chip), else 1 (v5e/v6e)."""
    try:
        kind = jax.devices()[0].device_kind.lower()
        if "v7" in kind or "7x" in kind:
            return 2
    except Exception:
        pass
    return 1


def _pick_l_tile(L, num_cores):
    """Fewest possible grid steps: full L on 1-TC chips, L/num_cores on multi-TC
    chips (one step per core), with a soft cap so very long L still fits VMEM."""
    if L % 128 != 0:
        return L                       # full-extent block is always legal
    tl = L
    if num_cores > 1 and L % (num_cores * 128) == 0:
        tl = L // num_cores
    while tl > 2048 and tl % 256 == 0:  # soft VMEM cap; irrelevant at small L
        tl //= 2
    return tl


def attention_block(x, params):
    """x: (B, C, L) float32 -> (B, C, L) float32 (matches the PyTorch forward)."""
    B, C, L = x.shape
    H, Dh = NUM_HEADS, C // NUM_HEADS
    scale = 1.0 / float(np.sqrt(Dh))
    TL = _pick_l_tile(L, _num_tensorcores())
    grid = (L // TL,)

    # One-time wrapper-side packing: fused QKV weight/bias with 1/sqrt(Dh) folded
    # into the q rows (scores are linear in q, incl. its bias), bf16 MXU operands.
    w_qkv = jnp.concatenate([params["wq"] * scale, params["wk"], params["wv"]],
                            axis=0).astype(jnp.bfloat16)                    # (3C, C)
    b_qkv = jnp.concatenate([params["bq"] * scale, params["bk"], params["bv"]]
                            ).reshape(3 * C, 1).astype(jnp.float32)         # (3C, 1)
    w_o = params["wo"].astype(jnp.bfloat16)                                 # (C, C)
    b_o = params["bo"].reshape(C, 1).astype(jnp.float32)
    gamma = params["ln_w"].reshape(C, 1).astype(jnp.float32)
    beta = params["ln_b"].reshape(C, 1).astype(jnp.float32)

    # 0/1 head selectors (exact in bf16): mh sums each head's Dh channels,
    # mht broadcasts a per-head value back to its Dh channels.
    heads = np.arange(C) // Dh
    m_head = jnp.asarray((np.arange(H)[:, None] == heads[None, :])
                         .astype(np.float32)).astype(jnp.bfloat16)          # (H, C)
    m_head_t = jnp.asarray((heads[:, None] == np.arange(H)[None, :])
                           .astype(np.float32)).astype(jnp.bfloat16)        # (C, H)

    x_spec = pl.BlockSpec((B, C, TL), lambda n: (0, 0, n))

    def const_spec(shape):
        # TODO(synk): at much larger C, mark constants single-buffered (they are
        # grid-invariant); at C=16 the default double-buffering is noise.
        return pl.BlockSpec(shape, lambda n: tuple(0 for _ in shape))

    out = pl.pallas_call(
        attention_block_kernel,
        out_shape=jax.ShapeDtypeStruct((B, C, L), jnp.float32),
        grid=grid,
        in_specs=[
            x_spec,                                   # x (B, C, TL)
            const_spec((3 * C, C)),                   # fused qkv weight (bf16)
            const_spec((3 * C, 1)),                   # fused qkv bias
            const_spec((C, C)),                       # out-proj weight (bf16)
            const_spec((C, 1)),                       # out-proj bias
            const_spec((C, 1)),                       # ln gamma
            const_spec((C, 1)),                       # ln beta
            const_spec((H, C)),                       # head selector (bf16)
            const_spec((C, H)),                       # head selector^T (bf16)
        ],
        out_specs=x_spec,
        scratch_shapes=[pltpu.VMEM((3 * C, B * TL), jnp.float32)],  # fused QKV slab
        compiler_params=pltpu.CompilerParams(
            dimension_semantics=("parallel",),        # 1 step/TC on multi-TC chips
            vmem_limit_bytes=32 * 1024 * 1024,        # >> actual usage on v5e/v6e/v7x
        ),
    )(x.astype(jnp.float32), w_qkv, b_qkv, w_o, b_o, gamma, beta, m_head, m_head_t)

    return out  # already (B, C, L): no wrapper-side output transpose


def reference(x, params):
    """Pure-JAX re-implementation of the PyTorch forward (for verification)."""
    B, C, L = x.shape
    Dh = C // NUM_HEADS
    y = jnp.transpose(x, (0, 2, 1))                   # (B, L, C); MHA sees (S=B, N=L, E=C)
    q = y @ params["wq"].T + params["bq"]
    k = y @ params["wk"].T + params["bk"]
    v = y @ params["wv"].T + params["bv"]
    qh = q.reshape(B, L, NUM_HEADS, Dh)
    kh = k.reshape(B, L, NUM_HEADS, Dh)
    vh = v.reshape(B, L, NUM_HEADS, Dh)
    s = jnp.einsum("snhd,tnhd->nhst", qh, kh) / np.sqrt(Dh)
    a = jax.nn.softmax(s, axis=-1)
    ctx = jnp.einsum("nhst,tnhd->snhd", a, vh).reshape(B, L, C)
    attn = ctx @ params["wo"].T + params["bo"]
    z = y + attn
    mean = jnp.mean(z, axis=-1, keepdims=True)
    var = jnp.mean((z - mean) ** 2, axis=-1, keepdims=True)
    out = (z - mean) / jnp.sqrt(var + LN_EPS) * params["ln_w"] + params["ln_b"]
    return jnp.transpose(out, (0, 2, 1))


def init_params(key, channels):
    C = channels
    ks = jax.random.split(key, 4)
    in_proj_w = 0.1 * jax.random.normal(ks[0], (3 * C, C), jnp.float32)
    in_proj_b = 0.1 * jax.random.normal(ks[1], (3 * C,), jnp.float32)
    out_proj_w = 0.1 * jax.random.normal(ks[2], (C, C), jnp.float32)
    out_proj_b = 0.1 * jax.random.normal(ks[3], (C,), jnp.float32)
    return {
        "wq": in_proj_w[:C], "wk": in_proj_w[C:2 * C], "wv": in_proj_w[2 * C:],
        "bq": in_proj_b[:C], "bk": in_proj_b[C:2 * C], "bv": in_proj_b[2 * C:],
        "wo": out_proj_w, "bo": out_proj_b,
        "ln_w": jnp.ones((C,), jnp.float32),   # nn.LayerNorm default init
        "ln_b": jnp.zeros((C,), jnp.float32),
    }


if __name__ == "__main__":
    # batch=2 (attention sequence), channels=16 (4 heads x head_dim 4), L=512 positions.
    B, C, L = 2, 16, 512
    key = jax.random.PRNGKey(0)
    kx, kp = jax.random.split(key)
    x = jax.random.normal(kx, (B, C, L), jnp.float32)
    params = init_params(kp, C)

    out = jax.block_until_ready(attention_block(x, params))
    ref = jax.block_until_ready(reference(x, params))

    assert out.shape == (B, C, L)
    # bf16 MXU operands + approx-reciprocal softmax -> loosened tolerances vs. f32 reference.
    np.testing.assert_allclose(np.asarray(out), np.asarray(ref), rtol=2e-2, atol=2e-2)
    print("KERNEL_OK")
</pallas_src>

<mosaic_0001>
module attributes {stable_mosaic.version = 11 : i64} {
  func.func @attention_block_kernel(%arg0: i32, %arg1: memref<2x16x512xf32, #tpu.memory_space<vmem>>, %arg2: memref<48x16xbf16, #tpu.memory_space<vmem>>, %arg3: memref<48x1xf32, #tpu.memory_space<vmem>>, %arg4: memref<16x16xbf16, #tpu.memory_space<vmem>>, %arg5: memref<16x1xf32, #tpu.memory_space<vmem>>, %arg6: memref<16x1xf32, #tpu.memory_space<vmem>>, %arg7: memref<16x1xf32, #tpu.memory_space<vmem>>, %arg8: memref<4x16xbf16, #tpu.memory_space<vmem>>, %arg9: memref<16x4xbf16, #tpu.memory_space<vmem>>, %arg10: memref<2x16x512xf32, #tpu.memory_space<vmem>>, %arg11: memref<48x1024xf32, #tpu.memory_space<vmem>>) attributes {dimension_semantics = [#tpu.dimension_semantics<parallel>], iteration_bounds = array<i64: 1>, scalar_prefetch = 0 : i64, scratch_operands = 1 : i64, tpu.core_type = #tpu.core_type<tc>, window_params = [{transform_indices = @transform_0, window_bounds = array<i64: 2, 16, 512>}, {pipeline_mode = #tpu.pipeline_mode<synchronous>, transform_indices = @transform_1, window_bounds = array<i64: 48, 16>}, {pipeline_mode = #tpu.pipeline_mode<synchronous>, transform_indices = @transform_2, window_bounds = array<i64: 48, 1>}, {pipeline_mode = #tpu.pipeline_mode<synchronous>, transform_indices = @transform_3, window_bounds = array<i64: 16, 16>}, {pipeline_mode = #tpu.pipeline_mode<synchronous>, transform_indices = @transform_4, window_bounds = array<i64: 16, 1>}, {pipeline_mode = #tpu.pipeline_mode<synchronous>, transform_indices = @transform_5, window_bounds = array<i64: 16, 1>}, {pipeline_mode = #tpu.pipeline_mode<synchronous>, transform_indices = @transform_6, window_bounds = array<i64: 16, 1>}, {pipeline_mode = #tpu.pipeline_mode<synchronous>, transform_indices = @transform_7, window_bounds = array<i64: 4, 16>}, {pipeline_mode = #tpu.pipeline_mode<synchronous>, transform_indices = @transform_8, window_bounds = array<i64: 16, 4>}, {transform_indices = @transform_9, window_bounds = array<i64: 2, 16, 512>}]} {
    %c0 = arith.constant 0 : index
    %c0_0 = arith.constant 0 : index
    %c0_1 = arith.constant 0 : index
    %0 = vector.load %arg1[%c0, %c0_0, %c0_1] : memref<2x16x512xf32, #tpu.memory_space<vmem>>, vector<1x16x512xf32>
    %1 = vector.shape_cast %0 : vector<1x16x512xf32> to vector<16x512xf32>
    %2 = arith.truncf %1 : vector<16x512xf32> to vector<16x512xbf16>
    %c1 = arith.constant 1 : index
    %c0_2 = arith.constant 0 : index
    %c0_3 = arith.constant 0 : index
    %3 = vector.load %arg1[%c1, %c0_2, %c0_3] : memref<2x16x512xf32, #tpu.memory_space<vmem>>, vector<1x16x512xf32>
    %4 = vector.shape_cast %3 : vector<1x16x512xf32> to vector<16x512xf32>
    %5 = arith.truncf %4 : vector<16x512xf32> to vector<16x512xbf16>
    %6 = tpu.concatenate %2, %5 in 1 : vector<16x512xbf16>, vector<16x512xbf16> -> vector<16x1024xbf16>
    %c0_4 = arith.constant 0 : index
    %c0_5 = arith.constant 0 : index
    %7 = vector.load %arg2[%c0_4, %c0_5] : memref<48x16xbf16, #tpu.memory_space<vmem>>, vector<48x16xbf16>
    %cst = arith.constant dense<0.000000e+00> : vector<48x1024xf32>
    %8 = tpu.matmul %7, %6, %cst {dimension_numbers = #tpu.dot_dimension_numbers<[1], [0], [0], [1], [0, 0, 1, 1], [], []>} : vector<48x16xbf16>, vector<16x1024xbf16>, vector<48x1024xf32> -> vector<48x1024xf32>
    %c0_6 = arith.constant 0 : index
    %c0_7 = arith.constant 0 : index
    %9 = vector.load %arg3[%c0_6, %c0_7] : memref<48x1xf32, #tpu.memory_space<vmem>>, vector<48x1xf32>
    %10 = vector.broadcast %9 : vector<48x1xf32> to vector<48x1024xf32>
    %11 = arith.addf %8, %10 : vector<48x1024xf32>
    %c0_8 = arith.constant 0 : index
    %c0_9 = arith.constant 0 : index
    %12 = vector.load %arg11[%c0_8, %c0_9] : memref<48x1024xf32, #tpu.memory_space<vmem>>, vector<48x1024xf32>
    tpu.vector_store %arg11[%c0_8, %c0_9], %11 {strides = array<i32>} : memref<48x1024xf32, #tpu.memory_space<vmem>>, vector<48x1024xf32>,
    %c0_10 = arith.constant 0 : index
    %c0_11 = arith.constant 0 : index
    %13 = vector.load %arg11[%c0_10, %c0_11] : memref<48x1024xf32, #tpu.memory_space<vmem>>, vector<16x512xf32>
    %c16 = arith.constant 16 : index
    %c0_12 = arith.constant 0 : index
    %14 = vector.load %arg11[%c16, %c0_12] : memref<48x1024xf32, #tpu.memory_space<vmem>>, vector<16x512xf32>
    %15 = arith.mulf %13, %14 : vector<16x512xf32>
    %16 = arith.truncf %15 : vector<16x512xf32> to vector<16x512xbf16>
    %c16_13 = arith.constant 16 : index
    %c512 = arith.constant 512 : index
    %17 = vector.load %arg11[%c16_13, %c512] : memref<48x1024xf32, #tpu.memory_space<vmem>>, vector<16x512xf32>
    %18 = arith.mulf %13, %17 : vector<16x512xf32>
    %19 = arith.truncf %18 : vector<16x512xf32> to vector<16x512xbf16>
    %c0_14 = arith.constant 0 : index
    %c512_15 = arith.constant 512 : index
    %20 = vector.load %arg11[%c0_14, %c512_15] : memref<48x1024xf32, #tpu.memory_space<vmem>>, vector<16x512xf32>
    %c16_16 = arith.constant 16 : index
    %c0_17 = arith.constant 0 : index
    %21 = vector.load %arg11[%c16_16, %c0_17] : memref<48x1024xf32, #tpu.memory_space<vmem>>, vector<16x512xf32>
    %22 = arith.mulf %20, %21 : vector<16x512xf32>
    %23 = arith.truncf %22 : vector<16x512xf32> to vector<16x512xbf16>
    %c16_18 = arith.constant 16 : index
    %c512_19 = arith.constant 512 : index
    %24 = vector.load %arg11[%c16_18, %c512_19] : memref<48x1024xf32, #tpu.memory_space<vmem>>, vector<16x512xf32>
    %25 = arith.mulf %20, %24 : vector<16x512xf32>
    %26 = arith.truncf %25 : vector<16x512xf32> to vector<16x512xbf16>
    %27 = tpu.concatenate %16, %19, %23, %26 in 1 : vector<16x512xbf16>, vector<16x512xbf16>, vector<16x512xbf16>, vector<16x512xbf16> -> vector<16x2048xbf16>
    %c0_20 = arith.constant 0 : index
    %c0_21 = arith.constant 0 : index
    %28 = vector.load %arg8[%c0_20, %c0_21] : memref<4x16xbf16, #tpu.memory_space<vmem>>, vector<4x16xbf16>
    %cst_22 = arith.constant dense<0.000000e+00> : vector<4x2048xf32>
    %29 = tpu.matmul %28, %27, %cst_22 {dimension_numbers = #tpu.dot_dimension_numbers<[1], [0], [0], [1], [0, 0, 1, 1], [], []>} : vector<4x16xbf16>, vector<16x2048xbf16>, vector<4x2048xf32> -> vector<4x2048xf32>
    %30 = vector.extract_strided_slice %29 {offsets = [0, 0], sizes = [4, 512], strides = [1, 1]} : vector<4x2048xf32> to vector<4x512xf32>
    %31 = vector.extract_strided_slice %29 {offsets = [0, 512], sizes = [4, 512], strides = [1, 1]} : vector<4x2048xf32> to vector<4x512xf32>
    %32 = arith.maximumf %30, %31 : vector<4x512xf32>
    %33 = arith.subf %30, %32 : vector<4x512xf32>
    %34 = math.exp %33 : vector<4x512xf32>
    %35 = arith.subf %31, %32 : vector<4x512xf32>
    %36 = math.exp %35 : vector<4x512xf32>
    %37 = arith.addf %34, %36 : vector<4x512xf32>
    %38 = tpu.reciprocal %37 {approx = true} : vector<4x512xf32> -> vector<4x512xf32>
    %39 = arith.mulf %34, %38 : vector<4x512xf32>
    %40 = arith.truncf %39 : vector<4x512xf32> to vector<4x512xbf16>
    %41 = arith.mulf %36, %38 : vector<4x512xf32>
    %42 = arith.truncf %41 : vector<4x512xf32> to vector<4x512xbf16>
    %43 = vector.extract_strided_slice %29 {offsets = [0, 1024], sizes = [4, 512], strides = [1, 1]} : vector<4x2048xf32> to vector<4x512xf32>
    %44 = vector.extract_strided_slice %29 {offsets = [0, 1536], sizes = [4, 512], strides = [1, 1]} : vector<4x2048xf32> to vector<4x512xf32>
    %45 = arith.maximumf %43, %44 : vector<4x512xf32>
    %46 = arith.subf %43, %45 : vector<4x512xf32>
    %47 = math.exp %46 : vector<4x512xf32>
    %48 = arith.subf %44, %45 : vector<4x512xf32>
    %49 = math.exp %48 : vector<4x512xf32>
    %50 = arith.addf %47, %49 : vector<4x512xf32>
    %51 = tpu.reciprocal %50 {approx = true} : vector<4x512xf32> -> vector<4x512xf32>
    %52 = arith.mulf %47, %51 : vector<4x512xf32>
    %53 = arith.truncf %52 : vector<4x512xf32> to vector<4x512xbf16>
    %54 = arith.mulf %49, %51 : vector<4x512xf32>
    %55 = arith.truncf %54 : vector<4x512xf32> to vector<4x512xbf16>
    %56 = tpu.concatenate %40, %42, %53, %55 in 1 : vector<4x512xbf16>, vector<4x512xbf16>, vector<4x512xbf16>, vector<4x512xbf16> -> vector<4x2048xbf16>
    %c0_23 = arith.constant 0 : index
    %c0_24 = arith.constant 0 : index
    %57 = vector.load %arg9[%c0_23, %c0_24] : memref<16x4xbf16, #tpu.memory_space<vmem>>, vector<16x4xbf16>
    %cst_25 = arith.constant dense<0.000000e+00> : vector<16x2048xf32>
    %58 = tpu.matmul %57, %56, %cst_25 {dimension_numbers = #tpu.dot_dimension_numbers<[1], [0], [0], [1], [0, 0, 1, 1], [], []>} : vector<16x4xbf16>, vector<4x2048xbf16>, vector<16x2048xf32> -> vector<16x2048xf32>
    %59 = vector.extract_strided_slice %58 {offsets = [0, 0], sizes = [16, 512], strides = [1, 1]} : vector<16x2048xf32> to vector<16x512xf32>
    %c32 = arith.constant 32 : index
    %c0_26 = arith.constant 0 : index
    %60 = vector.load %arg11[%c32, %c0_26] : memref<48x1024xf32, #tpu.memory_space<vmem>>, vector<16x512xf32>
    %61 = arith.mulf %59, %60 : vector<16x512xf32>
    %62 = vector.extract_strided_slice %58 {offsets = [0, 512], sizes = [16, 512], strides = [1, 1]} : vector<16x2048xf32> to vector<16x512xf32>
    %c32_27 = arith.constant 32 : index
    %c512_28 = arith.constant 512 : index
    %63 = vector.load %arg11[%c32_27, %c512_28] : memref<48x1024xf32, #tpu.memory_space<vmem>>, vector<16x512xf32>
    %64 = arith.mulf %62, %63 : vector<16x512xf32>
    %65 = arith.addf %61, %64 : vector<16x512xf32>
    %66 = arith.truncf %65 : vector<16x512xf32> to vector<16x512xbf16>
    %67 = vector.extract_strided_slice %58 {offsets = [0, 1024], sizes = [16, 512], strides = [1, 1]} : vector<16x2048xf32> to vector<16x512xf32>
    %c32_29 = arith.constant 32 : index
    %c0_30 = arith.constant 0 : index
    %68 = vector.load %arg11[%c32_29, %c0_30] : memref<48x1024xf32, #tpu.memory_space<vmem>>, vector<16x512xf32>
    %69 = arith.mulf %67, %68 : vector<16x512xf32>
    %70 = vector.extract_strided_slice %58 {offsets = [0, 1536], sizes = [16, 512], strides = [1, 1]} : vector<16x2048xf32> to vector<16x512xf32>
    %c32_31 = arith.constant 32 : index
    %c512_32 = arith.constant 512 : index
    %71 = vector.load %arg11[%c32_31, %c512_32] : memref<48x1024xf32, #tpu.memory_space<vmem>>, vector<16x512xf32>
    %72 = arith.mulf %70, %71 : vector<16x512xf32>
    %73 = arith.addf %69, %72 : vector<16x512xf32>
    %74 = arith.truncf %73 : vector<16x512xf32> to vector<16x512xbf16>
    %75 = tpu.concatenate %66, %74 in 1 : vector<16x512xbf16>, vector<16x512xbf16> -> vector<16x1024xbf16>
    %c0_33 = arith.constant 0 : index
    %c0_34 = arith.constant 0 : index
    %76 = vector.load %arg4[%c0_33, %c0_34] : memref<16x16xbf16, #tpu.memory_space<vmem>>, vector<16x16xbf16>
    %cst_35 = arith.constant dense<0.000000e+00> : vector<16x1024xf32>
    %77 = tpu.matmul %76, %75, %cst_35 {dimension_numbers = #tpu.dot_dimension_numbers<[1], [0], [0], [1], [0, 0, 1, 1], [], []>} : vector<16x16xbf16>, vector<16x1024xbf16>, vector<16x1024xf32> -> vector<16x1024xf32>
    %c0_36 = arith.constant 0 : index
    %c0_37 = arith.constant 0 : index
    %78 = vector.load %arg5[%c0_36, %c0_37] : memref<16x1xf32, #tpu.memory_space<vmem>>, vector<16x1xf32>
    %79 = vector.broadcast %78 : vector<16x1xf32> to vector<16x1024xf32>
    %80 = arith.addf %77, %79 : vector<16x1024xf32>
    %c0_38 = arith.constant 0 : index
    %c0_39 = arith.constant 0 : index
    %81 = vector.load %arg6[%c0_38, %c0_39] : memref<16x1xf32, #tpu.memory_space<vmem>>, vector<16x1xf32>
    %82 = vector.shape_cast %81 : vector<16x1xf32> to vector<16x1xf32>
    %83 = vector.broadcast %82 : vector<16x1xf32> to vector<16x512xf32>
    %c0_40 = arith.constant 0 : index
    %c0_41 = arith.constant 0 : index
    %84 = vector.load %arg7[%c0_40, %c0_41] : memref<16x1xf32, #tpu.memory_space<vmem>>, vector<16x1xf32>
    %85 = vector.shape_cast %84 : vector<16x1xf32> to vector<16x1xf32>
    %86 = vector.broadcast %85 : vector<16x1xf32> to vector<16x512xf32>
    %c0_42 = arith.constant 0 : index
    %c0_43 = arith.constant 0 : index
    %c0_44 = arith.constant 0 : index
    %87 = vector.load %arg1[%c0_42, %c0_43, %c0_44] : memref<2x16x512xf32, #tpu.memory_space<vmem>>, vector<1x16x512xf32>
    %88 = vector.shape_cast %87 : vector<1x16x512xf32> to vector<16x512xf32>
    %89 = vector.extract_strided_slice %80 {offsets = [0, 0], sizes = [16, 512], strides = [1, 1]} : vector<16x1024xf32> to vector<16x512xf32>
    %90 = arith.addf %88, %89 : vector<16x512xf32>
    %cst_45 = arith.constant dense<0.000000e+00> : vector<512xf32>
    %91 = vector.multi_reduction <add>, %90, %cst_45 [0] : vector<16x512xf32> to vector<512xf32>
    %92 = vector.shape_cast %91 : vector<512xf32> to vector<1x512xf32>
    %cst_46 = arith.constant 1.600000e+01 : f32
    %93 = vector.broadcast %cst_46 : f32 to vector<1x512xf32>
    %94 = arith.divf %92, %93 : vector<1x512xf32>
    %95 = vector.broadcast %94 : vector<1x512xf32> to vector<16x512xf32>
    %96 = arith.subf %90, %95 : vector<16x512xf32>
    %97 = arith.mulf %96, %96 : vector<16x512xf32>
    %cst_47 = arith.constant dense<0.000000e+00> : vector<512xf32>
    %98 = vector.multi_reduction <add>, %97, %cst_47 [0] : vector<16x512xf32> to vector<512xf32>
    %99 = vector.shape_cast %98 : vector<512xf32> to vector<1x512xf32>
    %cst_48 = arith.constant 1.600000e+01 : f32
    %100 = vector.broadcast %cst_48 : f32 to vector<1x512xf32>
    %101 = arith.divf %99, %100 : vector<1x512xf32>
    %102 = vector.broadcast %94 : vector<1x512xf32> to vector<16x512xf32>
    %103 = arith.subf %90, %102 : vector<16x512xf32>
    %cst_49 = arith.constant 9.99999974E-6 : f32
    %104 = vector.broadcast %cst_49 : f32 to vector<1x512xf32>
    %105 = arith.addf %101, %104 : vector<1x512xf32>
    %106 = math.rsqrt %105 : vector<1x512xf32>
    %107 = vector.broadcast %106 : vector<1x512xf32> to vector<16x512xf32>
    %108 = arith.mulf %103, %107 : vector<16x512xf32>
    %109 = arith.mulf %108, %83 : vector<16x512xf32>
    %110 = arith.addf %109, %86 : vector<16x512xf32>
    %c0_50 = arith.constant 0 : index
    %c0_51 = arith.constant 0 : index
    %c0_52 = arith.constant 0 : index
    %111 = vector.load %arg10[%c0_50, %c0_51, %c0_52] : memref<2x16x512xf32, #tpu.memory_space<vmem>>, vector<1x16x512xf32>
    %112 = vector.shape_cast %111 : vector<1x16x512xf32> to vector<16x512xf32>
    %113 = vector.shape_cast %110 : vector<16x512xf32> to vector<1x16x512xf32>
    tpu.vector_store %arg10[%c0_50, %c0_51, %c0_52], %113 {strides = array<i32>} : memref<2x16x512xf32, #tpu.memory_space<vmem>>, vector<1x16x512xf32>,
    %c1_53 = arith.constant 1 : index
    %c0_54 = arith.constant 0 : index
    %c0_55 = arith.constant 0 : index
    %114 = vector.load %arg1[%c1_53, %c0_54, %c0_55] : memref<2x16x512xf32, #tpu.memory_space<vmem>>, vector<1x16x512xf32>
    %115 = vector.shape_cast %114 : vector<1x16x512xf32> to vector<16x512xf32>
    %116 = vector.extract_strided_slice %80 {offsets = [0, 512], sizes = [16, 512], strides = [1, 1]} : vector<16x1024xf32> to vector<16x512xf32>
    %117 = arith.addf %115, %116 : vector<16x512xf32>
    %cst_56 = arith.constant dense<0.000000e+00> : vector<512xf32>
    %118 = vector.multi_reduction <add>, %117, %cst_56 [0] : vector<16x512xf32> to vector<512xf32>
    %119 = vector.shape_cast %118 : vector<512xf32> to vector<1x512xf32>
    %cst_57 = arith.constant 1.600000e+01 : f32
    %120 = vector.broadcast %cst_57 : f32 to vector<1x512xf32>
    %121 = arith.divf %119, %120 : vector<1x512xf32>
    %122 = vector.broadcast %121 : vector<1x512xf32> to vector<16x512xf32>
    %123 = arith.subf %117, %122 : vector<16x512xf32>
    %124 = arith.mulf %123, %123 : vector<16x512xf32>
    %cst_58 = arith.constant dense<0.000000e+00> : vector<512xf32>
    %125 = vector.multi_reduction <add>, %124, %cst_58 [0] : vector<16x512xf32> to vector<512xf32>
    %126 = vector.shape_cast %125 : vector<512xf32> to vector<1x512xf32>
    %cst_59 = arith.constant 1.600000e+01 : f32
    %127 = vector.broadcast %cst_59 : f32 to vector<1x512xf32>
    %128 = arith.divf %126, %127 : vector<1x512xf32>
    %129 = vector.broadcast %121 : vector<1x512xf32> to vector<16x512xf32>
    %130 = arith.subf %117, %129 : vector<16x512xf32>
    %cst_60 = arith.constant 9.99999974E-6 : f32
    %131 = vector.broadcast %cst_60 : f32 to vector<1x512xf32>
    %132 = arith.addf %128, %131 : vector<1x512xf32>
    %133 = math.rsqrt %132 : vector<1x512xf32>
    %134 = vector.broadcast %133 : vector<1x512xf32> to vector<16x512xf32>
    %135 = arith.mulf %130, %134 : vector<16x512xf32>
    %136 = arith.mulf %135, %83 : vector<16x512xf32>
    %137 = arith.addf %136, %86 : vector<16x512xf32>
    %c1_61 = arith.constant 1 : index
    %c0_62 = arith.constant 0 : index
    %c0_63 = arith.constant 0 : index
    %138 = vector.load %arg10[%c1_61, %c0_62, %c0_63] : memref<2x16x512xf32, #tpu.memory_space<vmem>>, vector<1x16x512xf32>
    %139 = vector.shape_cast %138 : vector<1x16x512xf32> to vector<16x512xf32>
    %140 = vector.shape_cast %137 : vector<16x512xf32> to vector<1x16x512xf32>
    tpu.vector_store %arg10[%c1_61, %c0_62, %c0_63], %140 {strides = array<i32>} : memref<2x16x512xf32, #tpu.memory_space<vmem>>, vector<1x16x512xf32>,
    return
  }
  func.func @transform_0(%arg0: i32) -> (i32, i32, i32) {
    %c0_i32 = arith.constant 0 : i32
    %c0_i32_0 = arith.constant 0 : i32
    %c0_i32_1 = arith.constant 0 : i32
    return %c0_i32, %c0_i32_0, %arg0 : i32, i32, i32
  }
  func.func @transform_1(%arg0: i32) -> (i32, i32) {
    %c0_i32 = arith.constant 0 : i32
    %c0_i32_0 = arith.constant 0 : i32
    %c0_i32_1 = arith.constant 0 : i32
    return %c0_i32, %c0_i32_0 : i32, i32
  }
  func.func @transform_2(%arg0: i32) -> (i32, i32) {
    %c0_i32 = arith.constant 0 : i32
    %c0_i32_0 = arith.constant 0 : i32
    %c0_i32_1 = arith.constant 0 : i32
    return %c0_i32, %c0_i32_0 : i32, i32
  }
  func.func @transform_3(%arg0: i32) -> (i32, i32) {
    %c0_i32 = arith.constant 0 : i32
    %c0_i32_0 = arith.constant 0 : i32
    %c0_i32_1 = arith.constant 0 : i32
    return %c0_i32, %c0_i32_0 : i32, i32
  }
  func.func @transform_4(%arg0: i32) -> (i32, i32) {
    %c0_i32 = arith.constant 0 : i32
    %c0_i32_0 = arith.constant 0 : i32
    %c0_i32_1 = arith.constant 0 : i32
    return %c0_i32, %c0_i32_0 : i32, i32
  }
  func.func @transform_5(%arg0: i32) -> (i32, i32) {
    %c0_i32 = arith.constant 0 : i32
    %c0_i32_0 = arith.constant 0 : i32
    %c0_i32_1 = arith.constant 0 : i32
    return %c0_i32, %c0_i32_0 : i32, i32
  }
  func.func @transform_6(%arg0: i32) -> (i32, i32) {
    %c0_i32 = arith.constant 0 : i32
    %c0_i32_0 = arith.constant 0 : i32
    %c0_i32_1 = arith.constant 0 : i32
    return %c0_i32, %c0_i32_0 : i32, i32
  }
  func.func @transform_7(%arg0: i32) -> (i32, i32) {
    %c0_i32 = arith.constant 0 : i32
    %c0_i32_0 = arith.constant 0 : i32
    %c0_i32_1 = arith.constant 0 : i32
    return %c0_i32, %c0_i32_0 : i32, i32
  }
  func.func @transform_8(%arg0: i32) -> (i32, i32) {
    %c0_i32 = arith.constant 0 : i32
    %c0_i32_0 = arith.constant 0 : i32
    %c0_i32_1 = arith.constant 0 : i32
    return %c0_i32, %c0_i32_0 : i32, i32
  }
  func.func @transform_9(%arg0: i32) -> (i32, i32, i32) {
    %c0_i32 = arith.constant 0 : i32
    %c0_i32_0 = arith.constant 0 : i32
    %c0_i32_1 = arith.constant 0 : i32
    return %c0_i32, %c0_i32_0, %arg0 : i32, i32, i32
  }
}

</mosaic_0001>

<bundles_post_ra>
// kernel: tpu_custom_call.1
= control target key start
LH: loop header
LB: loop body
LE: loop exit
PB: predicated region body
PF: predicated region fallthrough
CT: control target
= control target key end

     0   :  { %v2084_v7 = vmov 0   ;;  %vm116_vm0 = vcmask 130048   ;;  %s2797_s0 = inlined_call_operand.vmem [shape: f32[2,16,512], index: 0, kind: input, shape index: {}]   ;;  %s2798_s1 = inlined_call_operand.vmem [shape: bf16[48,16], index: 1, kind: input, shape index: {}]   ;;  %s2799_s2 = inlined_call_operand.vmem [shape: f32[48,1], index: 2, kind: input, shape index: {}]   ;;  %s2800_s3 = inlined_call_operand.vmem [shape: bf16[16,16], index: 3, kind: input, shape index: {}]   ;;  %s2801_s4 = inlined_call_operand.vmem [shape: f32[16,1], index: 4, kind: input, shape index: {}]   ;;  %s2802_s5 = inlined_call_operand.vmem [shape: f32[16,1], index: 5, kind: input, shape index: {}]   ;;  %s2803_s6 = inlined_call_operand.vmem [shape: f32[16,1], index: 6, kind: input, shape index: {}]   ;;  %s2804_s7 = inlined_call_operand.vmem [shape: bf16[4,16], index: 7, kind: input, shape index: {}]   ;;  %s2805_s8 = inlined_call_operand.vmem [shape: bf16[16,4], index: 8, kind: input, shape index: {}]   ;;  %s2806_s9 = inlined_call_operand.hbm [shape: f32[2,16,512], index: 9, kind: output, shape index: {}]  }
   0x1   :  { %v35_v0 = vld [vmem:[%s2797_s0 + $0x8] sm:$0xff]  ;;  %v37_v2 = vld [vmem:[%s2797_s0 + $0x18] sm:$0xff]  ;;  %v34_v5 = vld [vmem:[%s2797_s0] sm:$0xff]  ;;  %158 = vmatprep.mubr.bf16.mxu0 %v2084_v7  ;;  %221 = vmatprep.mubr.bf16.mxu1 %v2084_v7 }
   0x2   :  { %v39_v1 = vld [vmem:[%s2797_s0 + $0x28] sm:$0xff]  ;;  %v41_v4 = vld [vmem:[%s2797_s0 + $0x38] sm:$0xff]  ;;  %v38_v6 = vld [vmem:[%s2797_s0 + $0x20] sm:$0xff]  ;;  %1992 = vset.pattern.permute.xlu1 %v2084_v7  ;;  %1991 = vset.pattern.permute.xlu0 %v2084_v7 }
   0x3   :  { %v43_v3 = vpack.c.bf16 %v39_v1, %v35_v0  ;;  %v45_v8 = vpack.c.bf16 %v41_v4, %v37_v2  ;;  %v42_v9 = vpack.c.bf16 %v38_v6, %v34_v5  ;;  %v36_v10 = vld [vmem:[%s2797_s0 + $0x10] sm:$0xff]  ;;  %v1993_v13 = vld [vmem:[%s2798_s1] sm:$0xff]   ;;  %v1927_v14 = vld [vmem:[%s2797_s0 + $0x48] sm:$0xff] }
   0x4   :  { %v40_v11 = vld [vmem:[%s2797_s0 + $0x30] sm:$0xff]  ;;  %v1931_v15 = vld [vmem:[%s2797_s0 + $0x68] sm:$0xff]  ;;  %v1929_v16 = vld [vmem:[%s2797_s0 + $0x58] sm:$0xff] }
   0x5   :  { %140 = vmatprep.subr.bf16.mxu0 %v43_v3  ;;  %v44_v12 = vpack.c.bf16 %v40_v11, %v36_v10  ;;  %203 = vmatprep.subr.bf16.mxu1 %v45_v8  ;;  %v1933_v17 = vld [vmem:[%s2797_s0 + $0x78] sm:$0xff]  ;;  %v56_v18 = vpack.c.bf16 %v1931_v15, %v1927_v14  ;;  %v1926_v20 = vld [vmem:[%s2797_s0 + $0x40] sm:$0xff]  ;;  %v1928_v22 = vld [vmem:[%s2797_s0 + $0x50] sm:$0xff] }
   0x6   :  { %141 = vmatpush1.bf16.msra.mxu0 %v42_v9  ;;  %v58_v19 = vpack.c.bf16 %v1933_v17, %v1929_v16  ;;  %v1930_v21 = vld [vmem:[%s2797_s0 + $0x60] sm:$0xff]  ;;  %v1932_v24 = vld [vmem:[%s2797_s0 + $0x70] sm:$0xff]  ;;  %v1994_v28 = vld [vmem:[%s2798_s1 + $0x8] sm:$0xff]  }
   0x7   :  { %204 = vmatpush1.bf16.msra.mxu1 %v44_v12  ;;  %v55_v23 = vpack.c.bf16 %v1930_v21, %v1926_v20  ;;  %266 = vmatprep.subr.bf16.mxu0 %v56_v18  ;;  %v57_v25 = vpack.c.bf16 %v1932_v24, %v1928_v22  ;;  %v67_v26 = vld [vmem:[%s2799_s2 + $0x10] sm:$0xff]  ;;  %v65_v27 = vld [vmem:[%s2799_s2] sm:$0xff]  ;;  %v68_v29 = vld [vmem:[%s2799_s2 + $0x18] sm:$0xff] }
   0x8   :  { %329 = vmatprep.subr.bf16.mxu1 %v58_v19  ;;  %83 = vperm.xlu1 %1992, %v67_v26  }
   0x9   :  { %1937 = vmatmul.mubr.msk.bf16.vlgmr.msra.gmra.mxu0 %vm116_vm0, %v1993_v13  ;;  %73 = vperm.xlu0 %1991, %v65_v27  }
   0xa   :  { %1940 = vmatmul.mubr.msk.bf16.vlgmr.msra.gmra.mxu1 %vm116_vm0, %v1993_v13  ;;  %267 = vmatpush1.bf16.msra.mxu0 %v55_v23 }
   0xb   :  { %330 = vmatpush1.bf16.msra.mxu1 %v57_v25  ;;  %168 = vmatprep.mubr.bf16.mxu0 %v2084_v7 }
   0xc   :  { %231 = vmatprep.mubr.bf16.mxu1 %v2084_v7 }
   0xd   :  { %14 = vsyncpa [#allocation4], 0  ;;  %v66_v30 = vld [vmem:[%s2799_s2 + $0x8] sm:$0xff]  ;;  %88 = vperm.xlu1 %1992, %v68_v29   ;;  %v69_v32 = vld [vmem:[%s2799_s2 + $0x20] sm:$0xff]  ;;  %vm953_vm1 = vcmask 1041408   ;;  %vm949_vm2 = vcmask 31744  }
   0xe   :  { %v70_v31 = vld [vmem:[%s2799_s2 + $0x28] sm:$0xff]  ;;  %78 = vperm.xlu0 %1991, %v66_v30   ;;  %v1995_v33 = vld [vmem:[%s2798_s1 + $0x10] sm:$0xff]   ;;  %v1420_v35 = vld [vmem:[%s2801_s4] sm:$0xff] }
   0xf   :  { %v1421_v34 = vld [vmem:[%s2801_s4 + $0x8] sm:$0xff]  ;;  %v1612_v37 = vld [vmem:[%s2802_s5] sm:$0xff] }
  0x10   :  { %v1613_v36 = vld [vmem:[%s2802_s5 + $0x8] sm:$0xff]  ;;  %v1624_v39 = vld [vmem:[%s2803_s6] sm:$0xff] }
  0x11   :  { %1938 = vmatmul.mubr.msk.bf16.gmra.mxu0 %vm116_vm0, %v1994_v28  ;;  %98 = vperm.xlu1 %1992, %v70_v31   ;;  %v1625_v38 = vld [vmem:[%s2803_s6 + $0x8] sm:$0xff] }
  0x12   :  { %1941 = vmatmul.mubr.msk.bf16.gmra.mxu1 %vm116_vm0, %v1994_v28  ;;  %178 = vmatprep.mubr.bf16.mxu0 %v2084_v7 }
  0x13   :  { %241 = vmatprep.mubr.bf16.mxu1 %v2084_v7  ;;  %93 = vperm.xlu0 %1991, %v69_v32   ;;  %v2348_v32 = vld [vmem:[%s2804_s7] sm:$0x3] }
  0x15   :  { %1429 = vperm.xlu1 %1992, %v1421_v34  }
  0x17   :  { %1424 = vperm.xlu0 %1991, %v1420_v35  }
  0x19   :  { %1939 = vmatmul.mubr.msk.bf16.gmra.mxu0 %vm116_vm0, %v1995_v33  ;;  %1621 = vperm.xlu1 %1992, %v1613_v36  }
  0x1a   :  { %1942 = vmatmul.mubr.msk.bf16.gmra.mxu1 %vm116_vm0, %v1995_v33  ;;  %284 = vmatprep.mubr.bf16.mxu0 %v2084_v7 }
  0x1b   :  { %347 = vmatprep.mubr.bf16.mxu1 %v2084_v7  ;;  %1616 = vperm.xlu0 %1991, %v1612_v37  }
  0x1d   :  { %1633 = vperm.xlu1 %1992, %v1625_v38  }
  0x1f   :  { %1628 = vperm.xlu0 %1991, %v1624_v39  }
  0x21   :  { %1943 = vmatmul.mubr.msk.bf16.vlgmr.msra.gmra.mxu0 %vm116_vm0, %v1993_v13 }
  0x22   :  { %1946 = vmatmul.mubr.msk.bf16.vlgmr.msra.gmra.mxu1 %vm116_vm0, %v1993_v13  ;;  %294 = vmatprep.mubr.bf16.mxu0 %v2084_v7 }
  0x23   :  { %357 = vmatprep.mubr.bf16.mxu1 %v2084_v7 }
  0x29   :  { %1944 = vmatmul.mubr.msk.bf16.gmra.mxu0 %vm116_vm0, %v1994_v28 }
  0x2a   :  { %1947 = vmatmul.mubr.msk.bf16.gmra.mxu1 %vm116_vm0, %v1994_v28  ;;  %304 = vmatprep.mubr.bf16.mxu0 %v2084_v7 }
  0x2b   :  { %367 = vmatprep.mubr.bf16.mxu1 %v2084_v7 }
  0x31   :  { %1945 = vmatmul.mubr.msk.bf16.gmra.mxu0 %vm116_vm0, %v1995_v33 }
  0x32   :  { %1948 = vmatmul.mubr.msk.bf16.gmra.mxu1 %vm116_vm0, %v1995_v33  ;;  %542 = vmatprep.mubr.bf16.mxu0 %v2084_v7 }
  0x33   :  { %583 = vmatprep.mubr.bf16.mxu1 %v2084_v7 }
  0x83   :  { %v2261_v47 = vpop.permute.xlu1 %83 }
  0x84   :  { %v2259_v45 = vpop.permute.xlu0 %73 }
  0x88   :  { %v2265_v55 = vpop.permute.xlu1 %88 }
  0x89   :  { %v2263_v53 = vpop.permute.xlu0 %78 }
  0xc9   :  { %v160_v40 = vpop.f32.mrf.mxu0 }
  0xca   :  { %v223_v41 = vpop.f32.mrf.mxu1  ;;  %v2268_v57 = vadd.f32 %v160_v40, %v2259_v45 }
  0xcb   :  { %v162_v42 = vpop.f32.mrf.mxu0  ;;  %v2317_v14 = vadd.f32 %v223_v41, %v2259_v45 }
  0xcc   :  { %v225_v43 = vpop.f32.mrf.mxu1  ;;  %v2271_v58 = vadd.f32 %v162_v42, %v2259_v45 }
  0xcd   :  { %v164_v44 = vpop.f32.mrf.mxu0  ;;  %v2304_v9 = vadd.f32 %v225_v43, %v2259_v45 }
  0xce   :  { %v227_v46 = vpop.f32.mrf.mxu1  ;;  %v2280_v62 = vadd.f32 %v164_v44, %v2263_v53 }
  0xcf   :  { %v166_v48 = vpop.f32.mrf.mxu0  ;;  %v2292_v3 = vadd.f32 %v227_v46, %v2263_v53 }
  0xd0   :  { %v229_v49 = vpop.f32.mrf.mxu1  ;;  %v2295_v4 = vadd.f32 %v166_v48, %v2263_v53 }
  0xd1   :  { %v170_v50 = vpop.f32.mrf.mxu0  ;;  %v2307_v10 = vadd.f32 %v229_v49, %v2263_v53 }
  0xd2   :  { %v233_v51 = vpop.f32.mrf.mxu1  ;;  %v2283_v63 = vadd.f32 %v170_v50, %v2261_v47 }
  0xd3   :  { %v172_v52 = vpop.f32.mrf.mxu0  ;;  %v2298_v5 = vadd.f32 %v233_v51, %v2261_v47 }
  0xd4   :  { %v235_v54 = vpop.f32.mrf.mxu1  ;;  %v2274_v59 = vadd.f32 %v172_v52, %v2261_v47  ;;  %v442_v19 = vmul.f32 %v2283_v63, %v2268_v57 }
  0xd5   :  { %v174_v56 = vpop.f32.mrf.mxu0  ;;  %v2286_v0 = vadd.f32 %v235_v54, %v2261_v47  ;;  %v444_v23 = vmul.f32 %v2298_v5, %v2317_v14 }
  0xd6   :  { %v2277_v60 = vadd.f32 %v174_v56, %v2265_v55  ;;  %v237_v61 = vpop.f32.mrf.mxu1  ;;  %v443_v15 = vmul.f32 %v2274_v59, %v2271_v58 }
  0xd7   :  { %v2289_v1 = vadd.f32 %v237_v61, %v2265_v55  ;;  %v176_v2 = vpop.f32.mrf.mxu0  ;;  %v445_v20 = vmul.f32 %v2286_v0, %v2304_v9 }
  0xd8   :  { %v2301_v6 = vadd.f32 %v176_v2, %v2265_v55  ;;  %v239_v8 = vpop.f32.mrf.mxu1  ;;  %v446_v11 = vmul.f32 %v2277_v60, %v2280_v62 }
  0xd9   :  { %v2312_v12 = vadd.f32 %v239_v8, %v2265_v55  ;;  %v2314_v13 = vpop.f32.mrf.mxu0  ;;  %v448_v16 = vmul.f32 %v2289_v1, %v2292_v3 }
  0xda   :  { %v447_v17 = vmul.f32 %v2301_v6, %v2295_v4  ;;  %v2325_v18 = vpop.f32.mrf.mxu1  ;;  %v450_v26 = vpack.c.bf16 %v446_v11, %v442_v19 }
  0xdb   :  { %v449_v21 = vmul.f32 %v2312_v12, %v2307_v10  ;;  %v2333_v22 = vpop.f32.mrf.mxu0  ;;  %v452_v29 = vpack.c.bf16 %v448_v16, %v444_v23 }
  0xdc   :  { %v2337_v24 = vpop.f32.mrf.mxu1  ;;  %v451_v25 = vpack.c.bf16 %v447_v17, %v443_v15 }
  0xdd   :  { %v2339_v27 = vpop.f32.mrf.mxu0  ;;  %v453_v28 = vpack.c.bf16 %v449_v21, %v445_v20 }
  0xde   :  { %v2341_v30 = vpop.f32.mrf.mxu1  ;;  %524 = vmatprep.subr.bf16.mxu0 %v451_v25 }
  0xdf   :  { %565 = vmatprep.subr.bf16.mxu1 %v453_v28  ;;  %v2343_v31 = vpop.f32.mrf.mxu0  ;;  %525 = vmatpush1.bf16.msra.mxu0 %v450_v26 }
  0xe0   :  { %v2350_v33 = vpop.f32.mrf.mxu1  ;;  %566 = vmatpush1.bf16.msra.mxu1 %v452_v29 }
  0xe1   :  { %v286_v34 = vpop.f32.mrf.mxu0 }
  0xe2   :  { %v349_v35 = vpop.f32.mrf.mxu1  ;;  %1949 = vmatmul.mubr.msk.bf16.vlgmr.msra.gmra.mxu0 %vm116_vm0, %v2348_v32  ;;  %v2359_v49 = vadd.f32 %v286_v34, %v2259_v45 }
  0xe3   :  { %v288_v36 = vpop.f32.mrf.mxu0  ;;  %1950 = vmatmul.mubr.msk.bf16.vlgmr.msra.gmra.mxu1 %vm116_vm0, %v2348_v32  ;;  %624 = vmatprep.mubr.bf16.mxu0 %v2084_v7 }
  0xe4   :  { %v351_v37 = vpop.f32.mrf.mxu1  ;;  %665 = vmatprep.mubr.bf16.mxu1 %v2084_v7  ;;  %v289_v15 = vadd.f32 %v288_v36, %v2259_v45 }
  0xe5   :  { %v290_v38 = vpop.f32.mrf.mxu0  ;;  %v352_v16 = vadd.f32 %v351_v37, %v2259_v45 }
  0xe6   :  { %v353_v39 = vpop.f32.mrf.mxu1  ;;  %v291_v21 = vadd.f32 %v290_v38, %v2263_v53 }
  0xe7   :  { %v292_v40 = vpop.f32.mrf.mxu0  ;;  %v354_v23 = vadd.f32 %v353_v39, %v2263_v53 }
  0xe8   :  { %v355_v41 = vpop.f32.mrf.mxu1  ;;  %v293_v50 = vadd.f32 %v292_v40, %v2263_v53 }
  0xe9   :  { %v296_v42 = vpop.f32.mrf.mxu0  ;;  %v356_v56 = vadd.f32 %v355_v41, %v2263_v53 }
  0xea   :  { %v359_v43 = vpop.f32.mrf.mxu1  ;;  %v297_v61 = vadd.f32 %v296_v42, %v2261_v47  ;;  %v487_v28 = vmul.f32 %v293_v50, %v2301_v6 }
  0xeb   :  { %v298_v44 = vpop.f32.mrf.mxu0  ;;  %v360_v17 = vadd.f32 %v359_v43, %v2261_v47 }
  0xec   :  { %v361_v46 = vpop.f32.mrf.mxu1  ;;  %v299_v51 = vadd.f32 %v298_v44, %v2261_v47  ;;  %v462_v37 = vmul.f32 %v297_v61, %v2268_v57  ;;  %v494_v44 = vmul.f32 %v297_v61, %v2359_v49 }
  0xed   :  { %v300_v48 = vpop.f32.mrf.mxu0  ;;  %v362_v2 = vadd.f32 %v361_v46, %v2261_v47  ;;  %v489_v47 = vmul.f32 %v356_v56, %v2312_v12  ;;  %v464_v6 = vmul.f32 %v360_v17, %v2317_v14  ;;  %v488_v12 = vmul.f32 %v354_v23, %v2289_v1 }
  0xee   :  { %v301_v52 = vadd.f32 %v300_v48, %v2265_v55  ;;  %v363_v54 = vpop.f32.mrf.mxu1  ;;  %v463_v29 = vmul.f32 %v299_v51, %v2271_v58  ;;  %v485_v58 = vmul.f32 %v352_v16, %v2286_v0  ;;  %v495_v0 = vmul.f32 %v299_v51, %v289_v15 }
  0xef   :  { %v364_v8 = vadd.f32 %v363_v54, %v2265_v55  ;;  %v302_v11 = vpop.f32.mrf.mxu0  ;;  %v465_v38 = vmul.f32 %v362_v2, %v2304_v9 }
  0xf0   :  { %v303_v19 = vadd.f32 %v302_v11, %v2265_v55  ;;  %v365_v20 = vpop.f32.mrf.mxu1  ;;  %v466_v25 = vmul.f32 %v301_v52, %v2280_v62  ;;  %v350_v62 = vadd.f32 %v349_v35, %v2259_v45  ;;  %v482_v45 = vmul.f32 %v2359_v49, %v2283_v63 }
  0xf1   :  { %v366_v26 = vadd.f32 %v365_v20, %v2265_v55  ;;  %v468_v34 = vmul.f32 %v364_v8, %v2292_v3  ;;  %v483_v55 = vmul.f32 %v289_v15, %v2274_v59  ;;  %v486_v3 = vmul.f32 %v291_v21, %v2277_v60  ;;  %v2412_v49 = vpop.f32.mrf.mxu0 }
  0xf2   :  { %v467_v36 = vmul.f32 %v303_v19, %v2295_v4  ;;  %v470_v4 = vpack.c.bf16 %v466_v25, %v462_v37  ;;  %v499_v41 = vmul.f32 %v303_v19, %v293_v50  ;;  %v493_v59 = vpack.c.bf16 %v489_v47, %v485_v58  ;;  %v2414_v51 = vpop.f32.mrf.mxu1 }
  0xf3   :  { %v469_v53 = vmul.f32 %v366_v26, %v2307_v10  ;;  %v472_v57 = vpack.c.bf16 %v468_v34, %v464_v6  ;;  %v491_v9 = vpack.c.bf16 %v487_v28, %v483_v55  ;;  %v501_v10 = vmul.f32 %v366_v26, %v356_v56 }
  0xf4   :  { %v471_v39 = vpack.c.bf16 %v467_v36, %v463_v29  ;;  %v484_v14 = vmul.f32 %v350_v62, %v2298_v5  ;;  %v490_v60 = vpack.c.bf16 %v486_v3, %v482_v45  ;;  %v497_v35 = vmul.f32 %v362_v2, %v352_v16  ;;  %v2418_v54 = vpop.f32.mrf.mxu1 }
  0xf5   :  { %v473_v40 = vpack.c.bf16 %v469_v53, %v465_v38  ;;  %v503_v42 = vpack.c.bf16 %v499_v41, %v495_v0  ;;  %v498_v43 = vmul.f32 %v301_v52, %v291_v21  ;;  %v500_v5 = vmul.f32 %v364_v8, %v354_v23  ;;  %v2416_v52 = vpop.f32.mrf.mxu0 }
  0xf6   :  { %606 = vmatprep.subr.bf16.mxu0 %v471_v39  ;;  %v492_v1 = vpack.c.bf16 %v488_v12, %v484_v14  ;;  %v505_v63 = vpack.c.bf16 %v501_v10, %v497_v35  ;;  %v496_v46 = vmul.f32 %v360_v17, %v350_v62  ;;  %v2422_v61 = vpop.f32.mrf.mxu1 }
  0xf7   :  { %647 = vmatprep.subr.bf16.mxu1 %v473_v40  ;;  %607 = vmatpush1.bf16.msra.mxu0 %v470_v4  ;;  %v502_v48 = vpack.c.bf16 %v498_v43, %v494_v44  ;;  %v2420_v56 = vpop.f32.mrf.mxu0 }
  0xf8   :  { %648 = vmatpush1.bf16.msra.mxu1 %v472_v57  ;;  %688 = vmatprep.subr.bf16.mxu0 %v491_v9  ;;  %v504_v50 = vpack.c.bf16 %v500_v5, %v496_v46  ;;  %v2426_v8 = vpop.f32.mrf.mxu1 }
  0xf9   :  { %729 = vmatprep.subr.bf16.mxu1 %v493_v59  ;;  %v2424_v2 = vpop.f32.mrf.mxu0 }
  0xfa   :  { %1951 = vmatmul.mubr.msk.bf16.vlgmr.msra.gmra.mxu0 %vm116_vm0, %v2348_v32 }
  0xfb   :  { %1952 = vmatmul.mubr.msk.bf16.vlgmr.msra.gmra.mxu1 %vm116_vm0, %v2348_v32  ;;  %689 = vmatpush1.bf16.msra.mxu0 %v490_v60 }
  0xfc   :  { %730 = vmatpush1.bf16.msra.mxu1 %v492_v1  ;;  %770 = vmatprep.subr.bf16.mxu0 %v503_v42 }
  0xfd   :  { %811 = vmatprep.subr.bf16.mxu1 %v505_v63  ;;  %706 = vmatprep.mubr.bf16.mxu0 %v2084_v7 }
  0xfe   :  { %747 = vmatprep.mubr.bf16.mxu1 %v2084_v7 }
 0x102   :  { %1953 = vmatmul.mubr.msk.bf16.vlgmr.msra.gmra.mxu0 %vm116_vm0, %v2348_v32 }
 0x103   :  { %1954 = vmatmul.mubr.msk.bf16.vlgmr.msra.gmra.mxu1 %vm116_vm0, %v2348_v32  ;;  %771 = vmatpush1.bf16.msra.mxu0 %v502_v48 }
 0x104   :  { %812 = vmatpush1.bf16.msra.mxu1 %v504_v50  ;;  %788 = vmatprep.mubr.bf16.mxu0 %v2084_v7 }
 0x105   :  { %829 = vmatprep.mubr.bf16.mxu1 %v2084_v7 }
 0x10a   :  { %1955 = vmatmul.mubr.msk.bf16.vlgmr.msra.gmra.mxu0 %vm116_vm0, %v2348_v32 }
 0x10b   :  { %1956 = vmatmul.mubr.msk.bf16.vlgmr.msra.gmra.mxu1 %vm116_vm0, %v2348_v32  ;;  %1034 = vmatprep.mubr.bf16.mxu0 %v2084_v7 }
 0x10c   :  { %1077 = vmatprep.mubr.bf16.mxu1 %v2084_v7 }
 0x1a2   :  { %v544_v32 = vpop.f32.mrf.mxu0 }
 0x1a3   :  { %v585_v11 = vpop.f32.mrf.mxu1 }
 0x1a4   :  { %v546_v15 = vpop.f32.mrf.mxu0 }
 0x1a5   :  { %v587_v16 = vpop.f32.mrf.mxu1 }
 0x1a6   :  { %v548_v17 = vpop.f32.mrf.mxu0 }
 0x1a7   :  { %v589_v19 = vpop.f32.mrf.mxu1 }
 0x1a8   :  { %v549_v20 = vpop.f32.mrf.mxu0 }
 0x1a9   :  { %v590_v21 = vpop.f32.mrf.mxu1 }
 0x1ba   :  { %v626_v23 = vpop.f32.mrf.mxu0 }
 0x1bb   :  { %v838_v25 = vmax.f32 %v544_v32, %v626_v23  ;;  %v667_v26 = vpop.f32.mrf.mxu1 }
 0x1bc   :  { %v840_v28 = vmax.f32 %v585_v11, %v667_v26  ;;  %v628_v29 = vpop.f32.mrf.mxu0 }
 0x1bd   :  { %v842_v34 = vsub.f32 %v544_v32, %v838_v25  ;;  %v854_v36 = vsub.f32 %v626_v23, %v838_v25  ;;  %v839_v47 = vmax.f32 %v546_v15, %v628_v29  ;;  %v669_v37 = vpop.f32.mrf.mxu1 }
 0x1be   :  { %v844_v38 = vsub.f32 %v585_v11, %v840_v28  ;;  %v856_v53 = vsub.f32 %v667_v26, %v840_v28  ;;  %v841_v62 = vmax.f32 %v587_v16, %v669_v37  ;;  %v630_v55 = vpop.f32.mrf.mxu0 }
 0x1bf   :  { %v846_v6 = vmul.f32 1.442695, %v842_v34  ;;  %v858_v39 = vmul.f32 1.442695, %v854_v36  ;;  %v843_v58 = vsub.f32 %v546_v15, %v839_v47  ;;  %v855_v3 = vsub.f32 %v628_v29, %v839_v47  ;;  %v671_v4 = vpop.f32.mrf.mxu1 }
 0x1c0   :  { %v850_v40 = vmul.f32 1.442695, %v844_v38  ;;  %v862_v12 = vmul.f32 1.442695, %v856_v53  ;;  %v845_v57 = vsub.f32 %v587_v16, %v841_v62  ;;  %v857_v41 = vsub.f32 %v669_v37, %v841_v62  ;;  %v631_v9 = vpop.f32.mrf.mxu0 }
 0x1c1   :  { %1998 = vpow2.f32 %v846_v6  ;;  %v848_v45 = vmul.f32 1.442695, %v843_v58  ;;  %v672_v10 = vpop.f32.mrf.mxu1  ;;  %v860_v59 = vmul.f32 1.442695, %v855_v3 }
 0x1c2   :  { %2000 = vpow2.f32 %v858_v39  ;;  %v708_v14 = vpop.f32.mrf.mxu0  ;;  %v852_v0 = vmul.f32 1.442695, %v845_v57  ;;  %v864_v35 = vmul.f32 1.442695, %v857_v41 }
 0x1c3   :  { %2002 = vpow2.f32 %v850_v40  ;;  %v749_v60 = vpop.f32.mrf.mxu1 }
 0x1c4   :  { %2004 = vpow2.f32 %v862_v12  ;;  %v710_v1 = vpop.f32.mrf.mxu0 }
 0x1c5   :  { %2006 = vpow2.f32 %v848_v45  ;;  %v751_v42 = vpop.f32.mrf.mxu1 }
 0x1c6   :  { %2008 = vpow2.f32 %v860_v59  ;;  %v712_v63 = vpop.f32.mrf.mxu0 }
 0x1c7   :  { %2010 = vpow2.f32 %v852_v0  ;;  %v753_v43 = vpop.f32.mrf.mxu1 }
 0x1c8   :  { %2012 = vpow2.f32 %v864_v35  ;;  %v713_v5 = vpop.f32.mrf.mxu0 }
 0x1c9   :  { %v754_v44 = vpop.f32.mrf.mxu1 }
 0x1ca   :  { %v790_v46 = vpop.f32.mrf.mxu0 }
 0x1cb   :  { %v890_v48 = vmax.f32 %v708_v14, %v790_v46  ;;  %v831_v50 = vpop.f32.mrf.mxu1 }
 0x1cc   :  { %v892_v32 = vmax.f32 %v749_v60, %v831_v50  ;;  %v792_v11 = vpop.f32.mrf.mxu0 }
 0x1cd   :  { %v894_v15 = vsub.f32 %v708_v14, %v890_v48  ;;  %v906_v16 = vsub.f32 %v790_v46, %v890_v48  ;;  %v891_v17 = vmax.f32 %v710_v1, %v792_v11  ;;  %v833_v19 = vpop.f32.mrf.mxu1 }
 0x1ce   :  { %v1999_v20 = vpop.eup %1998  ;;  %v896_v21 = vsub.f32 %v749_v60, %v892_v32  ;;  %v794_v23 = vpop.f32.mrf.mxu0  ;;  %v908_v29 = vsub.f32 %v831_v50, %v892_v32  ;;  %v893_v34 = vmax.f32 %v751_v42, %v833_v19 }
 0x1cf   :  { %v2001_v25 = vpop.eup %2000  ;;  %v898_v26 = vmul.f32 1.442695, %v894_v15  ;;  %v910_v28 = vmul.f32 1.442695, %v906_v16  ;;  %v835_v36 = vpop.f32.mrf.mxu1  ;;  %v895_v55 = vsub.f32 %v710_v1, %v891_v17  ;;  %v907_v3 = vsub.f32 %v792_v11, %v891_v17 }
 0x1d0   :  { %v2003_v47 = vpop.eup %2002  ;;  %v866_v37 = vadd.f32 %v2001_v25, %v1999_v20  ;;  %v795_v38 = vpop.f32.mrf.mxu0  ;;  %v902_v62 = vmul.f32 1.442695, %v896_v21  ;;  %v914_v40 = vmul.f32 1.442695, %v908_v29  ;;  %v897_v12 = vsub.f32 %v751_v42, %v893_v34 }
 0x1d1   :  { %v2005_v53 = vpop.eup %2004  ;;  %2014 = vpow2.f32 %v898_v26  ;;  %v836_v6 = vpop.f32.mrf.mxu1  ;;  %v909_v9 = vsub.f32 %v833_v19, %v893_v34  ;;  %v900_v10 = vmul.f32 1.442695, %v895_v55  ;;  %v912_v14 = vmul.f32 1.442695, %v907_v3 }
 0x1d2   :  { %v2007_v39 = vpop.eup %2006  ;;  %2016 = vrcp.f32 %v866_v37  ;;  %v868_v58 = vadd.f32 %v2005_v53, %v2003_v47  ;;  %v904_v0 = vmul.f32 1.442695, %v897_v12 }
 0x1d3   :  { %v2009_v4 = vpop.eup %2008  ;;  %2018 = vpow2.f32 %v910_v28  ;;  %v916_v60 = vmul.f32 1.442695, %v909_v9 }
 0x1d4   :  { %v2011_v57 = vpop.eup %2010  ;;  %2020 = vrcp.f32 %v868_v58  ;;  %v867_v41 = vadd.f32 %v2009_v4, %v2007_v39 }
 0x1d5   :  { %v2013_v45 = vpop.eup %2012  ;;  %2022 = vpow2.f32 %v902_v62 }
 0x1d6   :  { %2024 = vrcp.f32 %v867_v41  ;;  %v869_v59 = vadd.f32 %v2013_v45, %v2011_v57 }
 0x1d7   :  { %2026 = vpow2.f32 %v914_v40 }
 0x1d8   :  { %2028 = vrcp.f32 %v869_v59 }
 0x1d9   :  { %2030 = vpow2.f32 %v900_v10 }
 0x1da   :  { %2032 = vpow2.f32 %v912_v14 }
 0x1db   :  { %2034 = vpow2.f32 %v904_v0 }
 0x1dc   :  { %2036 = vpow2.f32 %v916_v60 }
 0x1de   :  { %v2015_v35 = vpop.eup %2014 }
 0x1df   :  { %v2017_v1 = vpop.eup %2016 }
 0x1e0   :  { %v2428_v42 = vpop.eup %2018  ;;  %v874_v63 = vmul.f32 %v2017_v1, %v1999_v20  ;;  %v882_v50 = vmul.f32 %v2017_v1, %v2001_v25 }
 0x1e1   :  { %v2021_v43 = vpop.eup %2020  ;;  %v918_v5 = vadd.f32 %v2428_v42, %v2015_v35 }
 0x1e2   :  { %v2023_v44 = vpop.eup %2022  ;;  %v876_v46 = vmul.f32 %v2021_v43, %v2003_v47  ;;  %v878_v15 = vpack.c.bf16 %v874_v63, %v874_v63  ;;  %v884_v21 = vmul.f32 %v2021_v43, %v2005_v53  ;;  %v886_v36 = vpack.c.bf16 %v882_v50, %v882_v50  ;;  %v2436_v53 = vld [vmem:[%s2805_s8] sm:$0xff]  }
 0x1e3   :  { %v2025_v48 = vpop.eup %2024  ;;  %2038 = vrcp.f32 %v918_v5 }
 0x1e4   :  { %v2027_v32 = vpop.eup %2026  ;;  %v875_v11 = vmul.f32 %v2025_v48, %v2007_v39  ;;  %v883_v16 = vmul.f32 %v2025_v48, %v2009_v4  ;;  %v880_v20 = vpack.c.bf16 %v876_v46, %v876_v46  ;;  %v955_v38 = vsel %vm953_vm1, %v878_v15, 0 }
 0x1e5   :  { %v2029_v17 = vpop.eup %2028  ;;  %v920_v19 = vadd.f32 %v2027_v32, %v2023_v44  ;;  %v888_v6 = vpack.c.bf16 %v884_v21, %v884_v21  ;;  %v967_v4 = vsel %vm953_vm1, %v886_v36, 0 }
 0x1e6   :  { %v2031_v23 = vpop.eup %2030  ;;  %v879_v26 = vpack.c.bf16 %v875_v11, %v875_v11  ;;  %v877_v28 = vmul.f32 %v2029_v17, %v2011_v57  ;;  %v885_v34 = vmul.f32 %v2029_v17, %v2013_v45  ;;  %v887_v62 = vpack.c.bf16 %v883_v16, %v883_v16 }
 0x1e7   :  { %v2033_v29 = vpop.eup %2032  ;;  %2040 = vrcp.f32 %v920_v19  ;;  %v961_v58 = vsel %vm953_vm1, %v880_v20, 0  ;;  %v973_v40 = vsel %vm953_vm1, %v888_v6, 0 }
 0x1e8   :  { %v2035_v47 = vpop.eup %2034  ;;  %v919_v37 = vadd.f32 %v2033_v29, %v2031_v23  ;;  %1958 = vmatprep.subr.msk.bf16.mxu0 %vm953_vm1, %v879_v26  ;;  %v881_v25 = vpack.c.bf16 %v877_v28, %v877_v28  ;;  %v889_v3 = vpack.c.bf16 %v885_v34, %v885_v34  ;;  %v94_v28 = vpop.permute.xlu0 %93 }
 0x1e9   :  { %v2037_v55 = vpop.eup %2036  ;;  %1017 = vmatpush1.bf16.msra.mxu0 %v955_v38  ;;  %v99_v34 = vpop.permute.xlu1 %98  ;;  %v2478_v36 = vadd.f32 %v2314_v13, %v94_v28  ;;  %v2490_v38 = vadd.f32 %v2337_v24, %v94_v28 }
 0x1ea   :  { %2042 = vrcp.f32 %v919_v37  ;;  %v921_v39 = vadd.f32 %v2037_v55, %v2035_v47  ;;  %1960 = vmatprep.subr.msk.bf16.mxu1 %vm953_vm1, %v881_v25  ;;  %1962 = vmatprep.subr.msk.bf16.mxu0 %vm953_vm1, %v887_v62  ;;  %v2484_v37 = vadd.f32 %v2412_v49, %v94_v28  ;;  %v2487_v25 = vadd.f32 %v2333_v22, %v94_v28 }
 0x1eb   :  { %1060 = vmatpush1.bf16.msra.mxu1 %v961_v58  ;;  %v2493_v62 = vadd.f32 %v2339_v27, %v99_v34  ;;  %v2502_v49 = vadd.f32 %v2416_v52, %v94_v28  ;;  %v2507_v24 = vadd.f32 %v2343_v31, %v99_v34  ;;  %v2510_v27 = vadd.f32 %v2418_v54, %v94_v28 }
 0x1ec   :  { %2044 = vrcp.f32 %v921_v39  ;;  %1964 = vmatprep.subr.msk.bf16.mxu1 %vm953_vm1, %v889_v3  ;;  %1959 = vmatmul.mubr.msk.bf16.vlgmr.msra.gmra.mxu0 %vm949_vm2, %v2436_v53  ;;  %v2520_v31 = vadd.f32 %v2422_v61, %v99_v34  ;;  %v2523_v54 = vadd.f32 %v2424_v2, %v99_v34  ;;  %v2533_v61 = vadd.f32 %v2426_v8, %v99_v34 }
 0x1ed   :  { %1103 = vmatpush1.bf16.msra.mxu0 %v967_v4  ;;  %1120 = vmatprep.mubr.bf16.mxu0 %v2084_v7 }
 0x1ee   :  { %1961 = vmatmul.mubr.msk.bf16.vlgmr.msra.gmra.mxu1 %vm949_vm2, %v2436_v53 }
 0x1ef   :  { %1146 = vmatpush1.bf16.msra.mxu1 %v973_v40  ;;  %1163 = vmatprep.mubr.bf16.mxu1 %v2084_v7 }
 0x1f0   :  { %v2039_v12 = vpop.eup %2038 }
 0x1f1   :  { %v926_v41 = vmul.f32 %v2039_v12, %v2015_v35  ;;  %v934_v0 = vmul.f32 %v2039_v12, %v2428_v42 }
 0x1f3   :  { %v930_v59 = vpack.c.bf16 %v926_v41, %v926_v41  ;;  %v938_v50 = vpack.c.bf16 %v934_v0, %v934_v0 }
 0x1f4   :  { %v2041_v57 = vpop.eup %2040  ;;  %1963 = vmatmul.mubr.msk.bf16.vlgmr.msra.gmra.mxu0 %vm949_vm2, %v2436_v53 }
 0x1f5   :  { %1206 = vmatprep.mubr.bf16.mxu0 %v2084_v7  ;;  %v928_v9 = vmul.f32 %v2041_v57, %v2023_v44  ;;  %v936_v1 = vmul.f32 %v2041_v57, %v2027_v32  ;;  %v979_v48 = vsel %vm953_vm1, %v930_v59, 0  ;;  %v991_v15 = vsel %vm953_vm1, %v938_v50, 0 }
 0x1f6   :  { %1965 = vmatmul.mubr.msk.bf16.vlgmr.msra.gmra.mxu1 %vm949_vm2, %v2436_v53 }
 0x1f7   :  { %v2043_v45 = vpop.eup %2042  ;;  %1249 = vmatprep.mubr.bf16.mxu1 %v2084_v7  ;;  %v932_v5 = vpack.c.bf16 %v928_v9, %v928_v9  ;;  %v940_v32 = vpack.c.bf16 %v936_v1, %v936_v1 }
 0x1f8   :  { %v927_v10 = vmul.f32 %v2043_v45, %v2031_v23  ;;  %v935_v14 = vmul.f32 %v2043_v45, %v2033_v29 }
 0x1f9   :  { %v2045_v60 = vpop.eup %2044  ;;  %v985_v11 = vsel %vm953_vm1, %v932_v5, 0  ;;  %v997_v16 = vsel %vm953_vm1, %v940_v32, 0 }
 0x1fa   :  { %v931_v63 = vpack.c.bf16 %v927_v10, %v927_v10  ;;  %v929_v43 = vmul.f32 %v2045_v60, %v2035_v47  ;;  %v937_v35 = vmul.f32 %v2045_v60, %v2037_v55  ;;  %v939_v44 = vpack.c.bf16 %v935_v14, %v935_v14 }
 0x1fb   :  { %v2481_v47 = vadd.f32 %v2325_v18, %v94_v28  ;;  %v2499_v18 = vadd.f32 %v2414_v51, %v94_v28  ;;  %v2530_v14 = vadd.f32 %v2350_v33, %v99_v34 }
 0x1fc   :  { %1966 = vmatprep.subr.msk.bf16.mxu0 %vm953_vm1, %v931_v63  ;;  %v933_v46 = vpack.c.bf16 %v929_v43, %v929_v43  ;;  %v941_v42 = vpack.c.bf16 %v937_v35, %v937_v35 }
 0x1fd   :  { %1189 = vmatpush1.bf16.msra.mxu0 %v979_v48 }
 0x1fe   :  { %1968 = vmatprep.subr.msk.bf16.mxu1 %vm953_vm1, %v933_v46  ;;  %1970 = vmatprep.subr.msk.bf16.mxu0 %vm953_vm1, %v939_v44 }
 0x1ff   :  { %1232 = vmatpush1.bf16.msra.mxu1 %v985_v11 }
 0x200   :  { %1972 = vmatprep.subr.msk.bf16.mxu1 %vm953_vm1, %v941_v42  ;;  %1967 = vmatmul.mubr.msk.bf16.vlgmr.msra.gmra.mxu0 %vm949_vm2, %v2436_v53 }
 0x201   :  { %1275 = vmatpush1.bf16.msra.mxu0 %v991_v15  ;;  %1292 = vmatprep.mubr.bf16.mxu0 %v2084_v7 }
 0x202   :  { %1969 = vmatmul.mubr.msk.bf16.vlgmr.msra.gmra.mxu1 %vm949_vm2, %v2436_v53 }
 0x203   :  { %1318 = vmatpush1.bf16.msra.mxu1 %v997_v16  ;;  %1335 = vmatprep.mubr.bf16.mxu1 %v2084_v7 }
 0x208   :  { %1971 = vmatmul.mubr.msk.bf16.vlgmr.msra.gmra.mxu0 %vm949_vm2, %v2436_v53 }
 0x209   :  { %1472 = vmatprep.mubr.bf16.mxu0 %v2084_v7 }
 0x20a   :  { %1973 = vmatmul.mubr.msk.bf16.vlgmr.msra.gmra.mxu1 %vm949_vm2, %v2436_v53  ;;  %v2496_v53 = vadd.f32 %v2341_v30, %v99_v34  ;;  %v2513_v30 = vadd.f32 %v2420_v56, %v99_v34 }
 0x20b   :  { %1515 = vmatprep.mubr.bf16.mxu1 %v2084_v7 }
 0x2ac   :  { %v1036_v17 = vpop.f32.mrf.mxu0 }
 0x2ad   :  { %v1354_v22 = vmul.f32 %v1036_v17, %v2478_v36  ;;  %v1997_v17 = vld [vmem:[%s2800_s3] sm:$0xff]  }
 0x2ae   :  { %v1079_v19 = vpop.f32.mrf.mxu1  ;;  %v1038_v21 = vpop.f32.mrf.mxu0 }
 0x2af   :  { %v1356_v39 = vmul.f32 %v1079_v19, %v2481_v47  ;;  %v1355_v52 = vmul.f32 %v1038_v21, %v2487_v25 }
 0x2b0   :  { %v1081_v23 = vpop.f32.mrf.mxu1  ;;  %v1040_v26 = vpop.f32.mrf.mxu0 }
 0x2b1   :  { %v1357_v56 = vmul.f32 %v1081_v23, %v2490_v38  ;;  %v1358_v12 = vmul.f32 %v1040_v26, %v2493_v62 }
 0x2b2   :  { %v1083_v20 = vpop.f32.mrf.mxu1  ;;  %v1042_v29 = vpop.f32.mrf.mxu0 }
 0x2b3   :  { %v1360_v2 = vmul.f32 %v1083_v20, %v2496_v53  ;;  %v1359_v0 = vmul.f32 %v1042_v29, %v2507_v24 }
 0x2b4   :  { %v1085_v13 = vpop.f32.mrf.mxu1  ;;  %v1122_v55 = vpop.f32.mrf.mxu0 }
 0x2b5   :  { %v1370_v6 = vmul.f32 %v1122_v55, %v2484_v37  ;;  %v1361_v46 = vmul.f32 %v1085_v13, %v2530_v14 }
 0x2b6   :  { %v1165_v51 = vpop.f32.mrf.mxu1  ;;  %v1124_v58 = vpop.f32.mrf.mxu0 }
 0x2b7   :  { %v1378_v3 = vadd.f32 %v1370_v6, %v1354_v22  ;;  %v1372_v4 = vmul.f32 %v1165_v51, %v2499_v18  ;;  %v1371_v40 = vmul.f32 %v1124_v58, %v2502_v49 }
 0x2b8   :  { %v1167_v57 = vpop.f32.mrf.mxu1  ;;  %v1126_v41 = vpop.f32.mrf.mxu0 }
 0x2b9   :  { %v1380_v9 = vadd.f32 %v1372_v4, %v1356_v39  ;;  %v1379_v45 = vadd.f32 %v1371_v40, %v1355_v52  ;;  %v1373_v10 = vmul.f32 %v1167_v57, %v2510_v27  ;;  %v1374_v59 = vmul.f32 %v1126_v41, %v2513_v30 }
 0x2ba   :  { %v1169_v60 = vpop.f32.mrf.mxu1  ;;  %v1128_v1 = vpop.f32.mrf.mxu0 }
 0x2bb   :  { %v1381_v63 = vadd.f32 %v1373_v10, %v1357_v56  ;;  %v1382_v43 = vadd.f32 %v1374_v59, %v1358_v12  ;;  %v1376_v5 = vmul.f32 %v1169_v60, %v2520_v31  ;;  %v1375_v35 = vmul.f32 %v1128_v1, %v2523_v54 }
 0x2bc   :  { %v1171_v48 = vpop.f32.mrf.mxu1 }
 0x2bd   :  { %v1386_v33 = vpack.c.bf16 %v1382_v43, %v1378_v3  ;;  %v1384_v44 = vadd.f32 %v1376_v5, %v1360_v2  ;;  %v1383_v50 = vadd.f32 %v1375_v35, %v1359_v0  ;;  %v1377_v8 = vmul.f32 %v1171_v48, %v2533_v61  ;;  %v1636_v43 = vld [vmem:[%s2797_s0] sm:$0xff] }
 0x2bf   :  { %v1388_v11 = vpack.c.bf16 %v1384_v44, %v1380_v9  ;;  %v1385_v42 = vadd.f32 %v1377_v8, %v1361_v46  ;;  %v1387_v32 = vpack.c.bf16 %v1383_v50, %v1379_v45  ;;  %v1638_v44 = vld [vmem:[%s2797_s0 + $0x10] sm:$0xff]  ;;  %v1637_v50 = vld [vmem:[%s2797_s0 + $0x8] sm:$0xff] }
 0x2c0   :  { %v1208_v15 = vpop.f32.mrf.mxu0 }
 0x2c1   :  { %1454 = vmatprep.subr.bf16.mxu0 %v1387_v32  ;;  %v1389_v16 = vpack.c.bf16 %v1385_v42, %v1381_v63  ;;  %v1390_v13 = vmul.f32 %v1208_v15, %v2478_v36  ;;  %v2568_v63 = vpop.permute.xlu1 %1429  ;;  %v1642_v32 = vld [vmem:[%s2797_s0 + $0x30] sm:$0xff] }
 0x2c2   :  { %v1251_v19 = vpop.f32.mrf.mxu1  ;;  %v1210_v21 = vpop.f32.mrf.mxu0  ;;  %1455 = vmatpush1.bf16.msra.mxu0 %v1386_v33  ;;  %v1640_v33 = vld [vmem:[%s2797_s0 + $0x20] sm:$0xff] }
 0x2c3   :  { %1497 = vmatprep.subr.bf16.mxu1 %v1389_v16  ;;  %v1392_v22 = vmul.f32 %v1251_v19, %v2481_v47  ;;  %v1391_v51 = vmul.f32 %v1210_v21, %v2487_v25  ;;  %v1641_v16 = vld [vmem:[%s2797_s0 + $0x28] sm:$0xff]  ;;  %v1639_v19 = vld [vmem:[%s2797_s0 + $0x18] sm:$0xff] }
 0x2c4   :  { %v1253_v23 = vpop.f32.mrf.mxu1  ;;  %v1212_v26 = vpop.f32.mrf.mxu0  ;;  %1498 = vmatpush1.bf16.msra.mxu1 %v1388_v11 }
 0x2c5   :  { %1975 = vmatmul.mubr.msk.bf16.vlgmr.msra.gmra.mxu0 %vm116_vm0, %v1997_v17  ;;  %v1393_v4 = vmul.f32 %v1253_v23, %v2490_v38  ;;  %v1394_v40 = vmul.f32 %v1212_v26, %v2493_v62 }
 0x2c6   :  { %v1255_v28 = vpop.f32.mrf.mxu1  ;;  %v1214_v20 = vpop.f32.mrf.mxu0  ;;  %1558 = vmatprep.mubr.bf16.mxu0 %v2084_v7 }
 0x2c7   :  { %1976 = vmatmul.mubr.msk.bf16.vlgmr.msra.gmra.mxu1 %vm116_vm0, %v1997_v17  ;;  %v1396_v57 = vmul.f32 %v1255_v28, %v2496_v53  ;;  %v1395_v25 = vmul.f32 %v1214_v20, %v2507_v24 }
 0x2c8   :  { %v1257_v29 = vpop.f32.mrf.mxu1  ;;  %v1294_v34 = vpop.f32.mrf.mxu0  ;;  %1601 = vmatprep.mubr.bf16.mxu1 %v2084_v7 }
 0x2c9   :  { %v1398_v55 = vmul.f32 %v1294_v34, %v2484_v37  ;;  %v1397_v45 = vmul.f32 %v1257_v29, %v2530_v14  ;;  %v1643_v34 = vld [vmem:[%s2797_s0 + $0x38] sm:$0xff] }
 0x2ca   :  { %v1337_v6 = vpop.f32.mrf.mxu1  ;;  %v1296_v39 = vpop.f32.mrf.mxu0 }
 0x2cb   :  { %v1406_v58 = vadd.f32 %v1398_v55, %v1390_v13  ;;  %v1400_v52 = vmul.f32 %v1337_v6, %v2499_v18  ;;  %v1399_v3 = vmul.f32 %v1296_v39, %v2502_v49 }
 0x2cc   :  { %v1339_v7 = vpop.f32.mrf.mxu1  ;;  %v1298_v56 = vpop.f32.mrf.mxu0 }
 0x2cd   :  { %v1408_v36 = vadd.f32 %v1400_v52, %v1392_v22  ;;  %v1407_v12 = vadd.f32 %v1399_v3, %v1391_v51  ;;  %v1401_v37 = vmul.f32 %v1339_v7, %v2510_v27  ;;  %v1402_v47 = vmul.f32 %v1298_v56, %v2513_v30 }
 0x2ce   :  { %v1341_v41 = vpop.f32.mrf.mxu1  ;;  %v1300_v18 = vpop.f32.mrf.mxu0 }
 0x2cf   :  { %v1409_v9 = vadd.f32 %v1401_v37, %v1393_v4  ;;  %v1410_v49 = vadd.f32 %v1402_v47, %v1394_v40  ;;  %v1404_v38 = vmul.f32 %v1341_v41, %v2520_v31  ;;  %v1403_v62 = vmul.f32 %v1300_v18, %v2523_v54  ;;  %v2566_v54 = vpop.permute.xlu0 %1424 }
 0x2d0   :  { %v1343_v10 = vpop.f32.mrf.mxu1 }
 0x2d1   :  { %v1414_v59 = vpack.c.bf16 %v1410_v49, %v1406_v58  ;;  %v1412_v2 = vadd.f32 %v1404_v38, %v1396_v57  ;;  %v1411_v27 = vadd.f32 %v1403_v62, %v1395_v25  ;;  %v1405_v30 = vmul.f32 %v1343_v10, %v2533_v61 }
 0x2d3   :  { %v1416_v0 = vpack.c.bf16 %v1412_v2, %v1408_v36  ;;  %v1413_v53 = vadd.f32 %v1405_v30, %v1397_v45  ;;  %v1415_v60 = vpack.c.bf16 %v1411_v27, %v1407_v12  ;;  %v1979_v30 = vld [vmem:[%s2797_s0 + $0x40] sm:$0xff] }
 0x2d5   :  { %1540 = vmatprep.subr.bf16.mxu0 %v1415_v60  ;;  %v1417_v24 = vpack.c.bf16 %v1413_v53, %v1409_v9 }
 0x2d6   :  { %1541 = vmatpush1.bf16.msra.mxu0 %v1414_v59 }
 0x2d7   :  { %1583 = vmatprep.subr.bf16.mxu1 %v1417_v24 }
 0x2d8   :  { %1584 = vmatpush1.bf16.msra.mxu1 %v1416_v0 }
 0x2d9   :  { %1977 = vmatmul.mubr.msk.bf16.vlgmr.msra.gmra.mxu0 %vm116_vm0, %v1997_v17 }
 0x2db   :  { %1978 = vmatmul.mubr.msk.bf16.vlgmr.msra.gmra.mxu1 %vm116_vm0, %v1997_v17 }
 0x385   :  { %v1474_v31 = vpop.f32.mrf.mxu0 }
 0x386   :  { %v1475_v61 = vadd.f32 %v1474_v31, %v2566_v54 }
 0x387   :  { %v1517_v14 = vpop.f32.mrf.mxu1  ;;  %v1476_v1 = vpop.f32.mrf.mxu0 }
 0x388   :  { %v1518_v5 = vadd.f32 %v1517_v14, %v2566_v54  ;;  %v1477_v35 = vadd.f32 %v1476_v1, %v2566_v54  ;;  %v1644_v17 = vadd.f32 %v1636_v43, %v1475_v61  ;;  %v1981_v61 = vld [vmem:[%s2797_s0 + $0x50] sm:$0xff]  ;;  %v1980_v43 = vld [vmem:[%s2797_s0 + $0x48] sm:$0xff] }
 0x389   :  { %v1519_v46 = vpop.f32.mrf.mxu1  ;;  %v1478_v48 = vpop.f32.mrf.mxu0 }
 0x38a   :  { %v1479_v8 = vadd.f32 %v1478_v48, %v2568_v63  ;;  %v1520_v11 = vadd.f32 %v1519_v46, %v2566_v54  ;;  %v1646_v28 = vadd.f32 %v1638_v44, %v1518_v5  ;;  %v1645_v20 = vadd.f32 %v1637_v50, %v1477_v35 }
 0x38b   :  { %v1521_v42 = vpop.f32.mrf.mxu1  ;;  %v1480_v15 = vpop.f32.mrf.mxu0 }
 0x38c   :  { %v1648_v21 = vadd.f32 %v1640_v33, %v1479_v8  ;;  %v1522_v23 = vadd.f32 %v1521_v42, %v2568_v63  ;;  %v1481_v26 = vadd.f32 %v1480_v15, %v2568_v63  ;;  %v2602_v39 = vadd.f32 %v1639_v19, %v1520_v11  ;;  %v1982_v11 = vld [vmem:[%s2797_s0 + $0x58] sm:$0xff] }
 0x38d   :  { %v1523_v29 = vpop.f32.mrf.mxu1 }
 0x38e   :  { %v1652_v13 = vadd.f32 %v1648_v21, %v1644_v17  ;;  %v1650_v55 = vadd.f32 %v1642_v32, %v1522_v23  ;;  %v1649_v22 = vadd.f32 %v1641_v16, %v1481_v26  ;;  %v1524_v6 = vadd.f32 %v1523_v29, %v2568_v63 }
 0x390   :  { %v1653_v51 = vrot.slane %v1652_v13, 4  ;;  %v1666_v58 = vadd.f32 %v1650_v55, %v1646_v28  ;;  %v1659_v52 = vadd.f32 %v1649_v22, %v1645_v20  ;;  %v2604_v3 = vadd.f32 %v1643_v34, %v1524_v6 }
 0x392   :  { %v1654_v4 = vadd.f32 %v1653_v51, %v1652_v13  ;;  %v1667_v40 = vrot.slane %v1666_v58, 4  ;;  %v1660_v7 = vrot.slane %v1659_v52, 4  ;;  %v1673_v56 = vadd.f32 %v2604_v3, %v2602_v39 }
 0x394   :  { %v1655_v36 = vrot.slane %v1654_v4, 2  ;;  %v1668_v12 = vadd.f32 %v1667_v40, %v1666_v58  ;;  %v1661_v37 = vadd.f32 %v1660_v7, %v1659_v52  ;;  %v1674_v47 = vrot.slane %v1673_v56, 4 }
 0x396   :  { %v1656_v57 = vadd.f32 %v1655_v36, %v1654_v4  ;;  %v1669_v25 = vrot.slane %v1668_v12, 2  ;;  %v1662_v41 = vrot.slane %v1661_v37, 2  ;;  %v1675_v18 = vadd.f32 %v1674_v47, %v1673_v56  ;;  %v1985_v56 = vld [vmem:[%s2797_s0 + $0x70] sm:$0xff] }
 0x398   :  { %v1657_v9 = vrot.slane %v1656_v57, 1  ;;  %v1670_v49 = vadd.f32 %v1669_v25, %v1668_v12  ;;  %v1663_v38 = vadd.f32 %v1662_v41, %v1661_v37  ;;  %v1676_v62 = vrot.slane %v1675_v18, 2 }
 0x399   :  { %v1560_v45 = vpop.f32.mrf.mxu0 }
 0x39a   :  { %v1658_v10 = vadd.f32 %v1657_v9, %v1656_v57  ;;  %v1671_v59 = vrot.slane %v1670_v49, 1  ;;  %v1664_v2 = vrot.slane %v1663_v38, 1  ;;  %v1677_v27 = vadd.f32 %v1676_v62, %v1675_v18  ;;  %v1984_v57 = vld [vmem:[%s2797_s0 + $0x68] sm:$0xff] }
 0x39b   :  { %v1561_v0 = vadd.f32 %v1560_v45, %v2566_v54  ;;  %v1603_v53 = vpop.f32.mrf.mxu1  ;;  %v1562_v60 = vpop.f32.mrf.mxu0  ;;  %v1986_v45 = vld [vmem:[%s2797_s0 + $0x78] sm:$0xff] }
 0x39c   :  { %v1681_v24 = vmul.f32 0.0625, %v1658_v10  ;;  %v1672_v31 = vadd.f32 %v1671_v59, %v1670_v49  ;;  %v1665_v14 = vadd.f32 %v1664_v2, %v1663_v38  ;;  %v1678_v1 = vrot.slane %v1677_v27, 1 }
 0x39d   :  { %v2618_v5 = vadd.f32 %v1979_v30, %v1561_v0  ;;  %v1604_v35 = vadd.f32 %v1603_v53, %v2566_v54  ;;  %v1563_v46 = vadd.f32 %v1562_v60, %v2566_v54  ;;  %v1605_v48 = vpop.f32.mrf.mxu1  ;;  %v1564_v42 = vpop.f32.mrf.mxu0 }
 0x39e   :  { %v2622_v33 = vsub.f32 %v1644_v17, %v1681_v24  ;;  %v2624_v44 = vsub.f32 %v1648_v21, %v1681_v24  ;;  %v1683_v50 = vmul.f32 0.0625, %v1672_v31  ;;  %v1682_v8 = vmul.f32 0.0625, %v1665_v14 }
 0x39f   :  { %v1679_v32 = vadd.f32 %v1678_v1, %v1677_v27  ;;  %v2629_v15 = vadd.f32 %v1981_v61, %v1604_v35  ;;  %v2631_v16 = vadd.f32 %v1980_v43, %v1563_v46  ;;  %v1606_v19 = vadd.f32 %v1605_v48, %v2566_v54  ;;  %v1607_v29 = vpop.f32.mrf.mxu1  ;;  %v1983_v54 = vld [vmem:[%s2797_s0 + $0x60] sm:$0xff]  ;;  %s2085_s0 = smov [#allocation3]  }
 0x3a0   :  { %v1693_v17 = vmul.f32 %v2622_v33, %v2622_v33  ;;  %v1697_v21 = vmul.f32 %v2624_v44, %v2624_v44  ;;  %v2638_v23 = vsub.f32 %v1646_v28, %v1683_v50  ;;  %v2640_v26 = vsub.f32 %v1650_v55, %v1683_v50  ;;  %s1915_s30 = sshll.u32 %s2085_s0, 4  ;;  %s1916_s30 = int_to_ptr.vmem [resolvable:$true] %s1915_s30 }
 0x3a1   :  { %v2642_v34 = vsub.f32 %v1645_v20, %v1682_v8  ;;  %v2644_v13 = vsub.f32 %v1649_v22, %v1682_v8  ;;  %v1684_v6 = vmul.f32 0.0625, %v1679_v32  ;;  %v2646_v51 = vadd.f32 %v1982_v11, %v1606_v19  ;;  %v1566_v20 = vpop.f32.mrf.mxu0  ;;  %v1609_v25 = vpop.f32.mrf.mxu1  ;;  %s2062_s10 = scalar_lea.vmem %s1916_s30, 2048  ;;  %p2067_p1 = scmp.lt.s32.totalorder %s1916_s30, %s1916_s30 }
 0x3a2   :  { %v1701_v58 = vadd.f32 %v1697_v21, %v1693_v17  ;;  %v1695_v52 = vmul.f32 %v2638_v23, %v2638_v23  ;;  %v1699_v28 = vmul.f32 %v2640_v26, %v2640_v26  ;;  %v1565_v55 = vadd.f32 %v1564_v42, %v2568_v63  ;;  %p2063_p0 = scmp.ne.s32.totalorder %s1916_s30, %s2062_s10  ;;  %p2068_p2 = scmp.lt.s32.totalorder %s2062_s10, %s2062_s10 }
 0x3a3   :  { %v1694_v22 = vmul.f32 %v2642_v34, %v2642_v34  ;;  %v1698_v4 = vmul.f32 %v2644_v13, %v2644_v13  ;;  %v2661_v40 = vsub.f32 %v2602_v39, %v1684_v6  ;;  %v2664_v7 = vsub.f32 %v2604_v3, %v1684_v6 }
 0x3a4   :  { %v1702_v36 = vrot.slane %v1701_v58, 4  ;;  %v1715_v12 = vadd.f32 %v1699_v28, %v1695_v52  ;;  %v2669_v37 = vadd.f32 %v1983_v54, %v1565_v55  ;;  %v1608_v47 = vadd.f32 %v1607_v29, %v2568_v63  ;;  %p2069_p3 = por %p2068_p2, %p2067_p1 }
 0x3a5   :  { %v1708_v39 = vadd.f32 %v1698_v4, %v1694_v22  ;;  %v1696_v3 = vmul.f32 %v2661_v40, %v2661_v40  ;;  %v1700_v41 = vmul.f32 %v2664_v7, %v2664_v7  ;;  %v1567_v18 = vadd.f32 %v1566_v20, %v2568_v63 }
 0x3a6   :  { %v1703_v9 = vadd.f32 %v1702_v36, %v1701_v58  ;;  %v1716_v49 = vrot.slane %v1715_v12, 4  ;;  %v1789_v38 = vadd.f32 %v2669_v37, %v2618_v5  ;;  %v2682_v62 = vadd.f32 %v1985_v56, %v1608_v47  ;;  %p2070_p4 = pnand %p2069_p3, %p2063_p0 }
 0x3a7   :  { %v1709_v10 = vrot.slane %v1708_v39, 4  ;;  %v1722_v59 = vadd.f32 %v1700_v41, %v1696_v3  ;;  %v2687_v2 = vadd.f32 %v1984_v57, %v1567_v18  ;;  %v1610_v27 = vadd.f32 %v1609_v25, %v2568_v63 }
 0x3a8   :  { %v1704_v30 = vrot.slane %v1703_v9, 2  ;;  %v1717_v0 = vadd.f32 %v1716_v49, %v1715_v12  ;;  %v1790_v53 = vrot.slane %v1789_v38, 4  ;;  %v1803_v60 = vadd.f32 %v2682_v62, %v2629_v15 }
 0x3a9   :  { %v1710_v24 = vadd.f32 %v1709_v10, %v1708_v39  ;;  %v1723_v31 = vrot.slane %v1722_v59, 4  ;;  %v1796_v14 = vadd.f32 %v2687_v2, %v2631_v16  ;;  %v2694_v1 = vadd.f32 %v1986_v45, %v1610_v27 }
 0x3aa   :  { %v1705_v61 = vadd.f32 %v1704_v30, %v1703_v9  ;;  %v1718_v43 = vrot.slane %v1717_v0, 2  ;;  %v1791_v35 = vadd.f32 %v1790_v53, %v1789_v38  ;;  %v1804_v46 = vrot.slane %v1803_v60, 4 }
 0x3ab   :  { %v1711_v48 = vrot.slane %v1710_v24, 2  ;;  %v1724_v50 = vadd.f32 %v1723_v31, %v1722_v59  ;;  %v1797_v63 = vrot.slane %v1796_v14, 4  ;;  %v1810_v8 = vadd.f32 %v2694_v1, %v2646_v51 }
 0x3ac   :  { %v1706_v11 = vrot.slane %v1705_v61, 1  ;;  %v1719_v42 = vadd.f32 %v1718_v43, %v1717_v0  ;;  %v1792_v32 = vrot.slane %v1791_v35, 2  ;;  %v1805_v19 = vadd.f32 %v1804_v46, %v1803_v60 }
 0x3ad   :  { %v1712_v17 = vadd.f32 %v1711_v48, %v1710_v24  ;;  %v1725_v21 = vrot.slane %v1724_v50, 2  ;;  %v1798_v29 = vadd.f32 %v1797_v63, %v1796_v14  ;;  %v1811_v6 = vrot.slane %v1810_v8, 4 }
 0x3ae   :  { %v1707_v54 = vadd.f32 %v1706_v11, %v1705_v61  ;;  %v1720_v58 = vrot.slane %v1719_v42, 1  ;;  %v1793_v52 = vadd.f32 %v1792_v32, %v1791_v35  ;;  %v1806_v28 = vrot.slane %v1805_v19, 2 }
 0x3af   :  { %v1713_v55 = vrot.slane %v1712_v17, 1  ;;  %v1726_v20 = vadd.f32 %v1725_v21, %v1724_v50  ;;  %v1799_v22 = vrot.slane %v1798_v29, 2  ;;  %v1812_v4 = vadd.f32 %v1811_v6, %v1810_v8 }
 0x3b0   :  { %v1729_v56 = vmul.f32 0.0625, %v1707_v54  ;;  %v1721_v36 = vadd.f32 %v1720_v58, %v1719_v42  ;;  %v1794_v12 = vrot.slane %v1793_v52, 1  ;;  %v1807_v47 = vadd.f32 %v1806_v28, %v1805_v19 }
 0x3b1   :  { %v1714_v57 = vadd.f32 %v1713_v55, %v1712_v17  ;;  %v1727_v25 = vrot.slane %v1726_v20, 1  ;;  %v1800_v39 = vadd.f32 %v1799_v22, %v1798_v29  ;;  %v1813_v3 = vrot.slane %v1812_v4, 2  ;;  %v2738_v55 = vpop.permute.xlu1 %1621 }
 0x3b2   :  { %v1733_v41 = vadd.f32 1e-05, %v1729_v56  ;;  %v1731_v18 = vmul.f32 0.0625, %v1721_v36  ;;  %v1795_v9 = vadd.f32 %v1794_v12, %v1793_v52  ;;  %v1808_v49 = vrot.slane %v1807_v47, 1 }
 0x3b3   :  { %v1730_v38 = vmul.f32 0.0625, %v1714_v57  ;;  %v1728_v45 = vadd.f32 %v1727_v25, %v1726_v20  ;;  %v1801_v10 = vrot.slane %v1800_v39, 1  ;;  %v1814_v59 = vadd.f32 %v1813_v3, %v1812_v4  ;;  %v2740_v20 = vpop.permute.xlu0 %1616 }
 0x3b4   :  { %2046 = vrsqrt.f32 %v1733_v41  ;;  %v1735_v27 = vadd.f32 1e-05, %v1731_v18  ;;  %v1817_v30 = vmul.f32 0.0625, %v1795_v9  ;;  %v1809_v0 = vadd.f32 %v1808_v49, %v1807_v47 }
 0x3b5   :  { %v1734_v53 = vadd.f32 1e-05, %v1730_v38  ;;  %v1732_v60 = vmul.f32 0.0625, %v1728_v45  ;;  %v1802_v24 = vadd.f32 %v1801_v10, %v1800_v39  ;;  %v1815_v31 = vrot.slane %v1814_v59, 1 }
 0x3b6   :  { %2048 = vrsqrt.f32 %v1735_v27  ;;  %v2699_v14 = vsub.f32 %v2618_v5, %v1817_v30  ;;  %v2702_v61 = vsub.f32 %v2669_v37, %v1817_v30  ;;  %v1819_v43 = vmul.f32 0.0625, %v1809_v0 }
 0x3b7   :  { %2050 = vrsqrt.f32 %v1734_v53  ;;  %v1736_v35 = vadd.f32 1e-05, %v1732_v60  ;;  %v1818_v46 = vmul.f32 0.0625, %v1802_v24  ;;  %v1816_v48 = vadd.f32 %v1815_v31, %v1814_v59  ;;  %v2748_v59 = vpop.permute.xlu1 %1633  ;;  %v2750_v27 = vpop.permute.xlu0 %1628 }
 0x3b8   :  { %v1829_v50 = vmul.f32 %v2699_v14, %v2699_v14  ;;  %v1833_v63 = vmul.f32 %v2702_v61, %v2702_v61  ;;  %v2709_v8 = vsub.f32 %v2629_v15, %v1819_v43  ;;  %v2712_v5 = vsub.f32 %v2682_v62, %v1819_v43 }
 0x3b9   :  { %2052 = vrsqrt.f32 %v1736_v35  ;;  %v2715_v37 = vsub.f32 %v2631_v16, %v1818_v46  ;;  %v2718_v11 = vsub.f32 %v2687_v2, %v1818_v46  ;;  %v1820_v42 = vmul.f32 0.0625, %v1816_v48 }
 0x3ba   :  { %v1837_v32 = vadd.f32 %v1833_v63, %v1829_v50  ;;  %v1831_v19 = vmul.f32 %v2709_v8, %v2709_v8  ;;  %v1835_v17 = vmul.f32 %v2712_v5, %v2712_v5 }
 0x3bb   :  { %v1830_v15 = vmul.f32 %v2715_v37, %v2715_v37  ;;  %v1834_v62 = vmul.f32 %v2718_v11, %v2718_v11  ;;  %v2729_v16 = vsub.f32 %v2646_v51, %v1820_v42  ;;  %v2732_v2 = vsub.f32 %v2694_v1, %v1820_v42 }
 0x3bc   :  { %v1838_v21 = vrot.slane %v1837_v32, 4  ;;  %v1851_v29 = vadd.f32 %v1835_v17, %v1831_v19 }
 0x3bd   :  { %v1844_v6 = vadd.f32 %v1834_v62, %v1830_v15  ;;  %v1832_v54 = vmul.f32 %v2729_v16, %v2729_v16  ;;  %v1836_v58 = vmul.f32 %v2732_v2, %v2732_v2 }
 0x3be   :  { %v1839_v52 = vadd.f32 %v1838_v21, %v1837_v32  ;;  %v1852_v28 = vrot.slane %v1851_v29, 4 }
 0x3bf   :  { %v1845_v51 = vrot.slane %v1844_v6, 4  ;;  %v1858_v22 = vadd.f32 %v1836_v58, %v1832_v54 }
 0x3c0   :  { %v1840_v4 = vrot.slane %v1839_v52, 2  ;;  %v1853_v1 = vadd.f32 %v1852_v28, %v1851_v29 }
 0x3c1   :  { %v2047_v56 = vpop.eup %2046  ;;  %v1846_v36 = vadd.f32 %v1845_v51, %v1844_v6  ;;  %v1859_v12 = vrot.slane %v1858_v22, 4 }
 0x3c2   :  { %v1741_v47 = vmul.f32 %v2047_v56, %v2622_v33  ;;  %v1745_v57 = vmul.f32 %v2047_v56, %v2624_v44  ;;  %v1841_v25 = vadd.f32 %v1840_v4, %v1839_v52  ;;  %v1854_v39 = vrot.slane %v1853_v1, 2 }
 0x3c3   :  { %v2049_v3 = vpop.eup %2048  ;;  %v1847_v41 = vrot.slane %v1846_v36, 2  ;;  %v1860_v18 = vadd.f32 %v1859_v12, %v1858_v22 }
 0x3c4   :  { %v2051_v9 = vpop.eup %2050  ;;  %v1749_v49 = vmul.f32 %v1741_v47, %v2740_v20  ;;  %v1753_v38 = vmul.f32 %v1745_v57, %v2738_v55  ;;  %v1743_v45 = vmul.f32 %v2049_v3, %v2638_v23  ;;  %v1747_v10 = vmul.f32 %v2049_v3, %v2640_v26 }
 0x3c5   :  { %v1742_v33 = vmul.f32 %v2051_v9, %v2642_v34  ;;  %v1746_v44 = vmul.f32 %v2051_v9, %v2644_v13  ;;  %v1842_v30 = vrot.slane %v1841_v25, 1  ;;  %v1855_v0 = vadd.f32 %v1854_v39, %v1853_v1 }
 0x3c6   :  { %v2053_v53 = vpop.eup %2052  ;;  %v1757_v60 = vadd.f32 %v1749_v49, %v2750_v27  ;;  %v1761_v24 = vadd.f32 %v1753_v38, %v2748_v59  ;;  %v1751_v31 = vmul.f32 %v1743_v45, %v2740_v20  ;;  %v1755_v23 = vmul.f32 %v1747_v10, %v2738_v55 }
 0x3c7   :  { %v1750_v26 = vmul.f32 %v1742_v33, %v2740_v20  ;;  %v1754_v43 = vmul.f32 %v1746_v44, %v2738_v55  ;;  %v1744_v35 = vmul.f32 %v2053_v53, %v2661_v40  ;;  %v1748_v34 = vmul.f32 %v2053_v53, %v2664_v7 }
 0x3c8   :  { %1765 = vst [vmem:[#allocation3] sm:$0xff] %v1757_v60  ;;  %1769 = vst [vmem:[#allocation3 + $0x20] sm:$0xff] %v1761_v24  ;;  %v1759_v13 = vadd.f32 %v1751_v31, %v2750_v27  ;;  %v1763_v46 = vadd.f32 %v1755_v23, %v2748_v59  ;;  %v1843_v48 = vadd.f32 %v1842_v30, %v1841_v25  ;;  %v1856_v50 = vrot.slane %v1855_v0, 1 }
 0x3c9   :  { %v1758_v63 = vadd.f32 %v1750_v26, %v2750_v27  ;;  %v1762_v42 = vadd.f32 %v1754_v43, %v2748_v59  ;;  %v1752_v32 = vmul.f32 %v1744_v35, %v2740_v20  ;;  %v1756_v19 = vmul.f32 %v1748_v34, %v2738_v55 }
 0x3ca   :  { %1767 = vst [vmem:[#allocation3 + $0x10] sm:$0xff] %v1759_v13  ;;  %1771 = vst [vmem:[#allocation3 + $0x30] sm:$0xff] %v1763_v46  ;;  %v1865_v40 = vmul.f32 0.0625, %v1843_v48  ;;  %v1857_v7 = vadd.f32 %v1856_v50, %v1855_v0  ;;  %v1848_v17 = vadd.f32 %v1847_v41, %v1846_v36  ;;  %v1861_v15 = vrot.slane %v1860_v18, 2 }
 0x3cb   :  { %1766 = vst [vmem:[#allocation3 + $0x8] sm:$0xff] %v1758_v63  ;;  %1770 = vst [vmem:[#allocation3 + $0x28] sm:$0xff] %v1762_v42  ;;  %v1760_v62 = vadd.f32 %v1752_v32, %v2750_v27  ;;  %v1764_v21 = vadd.f32 %v1756_v19, %v2748_v59 }
 0x3cc   :  { %v1869_v29 = vadd.f32 1e-05, %v1865_v40  ;;  %v1867_v6 = vmul.f32 0.0625, %v1857_v7  ;;  %v1849_v54 = vrot.slane %v1848_v17, 1  ;;  %v1862_v58 = vadd.f32 %v1861_v15, %v1860_v18 }
 0x3cd   :  { %1768 = vst [vmem:[#allocation3 + $0x18] sm:$0xff] %v1760_v62  ;;  %1772 = vst [vmem:[#allocation3 + $0x38] sm:$0xff] %v1764_v21 }
 0x3ce   :  { %2054 = vrsqrt.f32 %v1869_v29  ;;  %v1871_v52 = vadd.f32 1e-05, %v1867_v6  ;;  %v1850_v28 = vadd.f32 %v1849_v54, %v1848_v17  ;;  %v1863_v51 = vrot.slane %v1862_v58, 1 }
 0x3d0   :  { %2056 = vrsqrt.f32 %v1871_v52  ;;  %v1866_v22 = vmul.f32 0.0625, %v1850_v28  ;;  %v1864_v4 = vadd.f32 %v1863_v51, %v1862_v58 }
 0x3d2   :  { %v1870_v1 = vadd.f32 1e-05, %v1866_v22  ;;  %v1868_v56 = vmul.f32 0.0625, %v1864_v4 }
 0x3d4   :  { %2058 = vrsqrt.f32 %v1870_v1  ;;  %v1872_v36 = vadd.f32 1e-05, %v1868_v56 }
 0x3d6   :  { %2060 = vrsqrt.f32 %v1872_v36 }
 0x3db   :  { %v2055_v12 = vpop.eup %2054 }
 0x3dc   :  { %v1877_v47 = vmul.f32 %v2055_v12, %v2699_v14  ;;  %v1881_v57 = vmul.f32 %v2055_v12, %v2702_v61 }
 0x3dd   :  { %v2057_v25 = vpop.eup %2056 }
 0x3de   :  { %v1885_v39 = vmul.f32 %v1877_v47, %v2740_v20  ;;  %v1889_v3 = vmul.f32 %v1881_v57, %v2738_v55  ;;  %v1879_v41 = vmul.f32 %v2057_v25, %v2709_v8  ;;  %v1883_v18 = vmul.f32 %v2057_v25, %v2712_v5 }
 0x3e0   :  { %v1893_v9 = vadd.f32 %v1885_v39, %v2750_v27  ;;  %v1897_v49 = vadd.f32 %v1889_v3, %v2748_v59  ;;  %v1887_v38 = vmul.f32 %v1879_v41, %v2740_v20  ;;  %v1891_v45 = vmul.f32 %v1883_v18, %v2738_v55 }
 0x3e1   :  { %v2059_v14 = vpop.eup %2058 }
 0x3e2   :  { %1902 = vst [vmem:[#allocation3 + $0x40] sm:$0xff] %v1893_v9  ;;  %1906 = vst [vmem:[#allocation3 + $0x60] sm:$0xff] %v1897_v49  ;;  %v1895_v61 = vadd.f32 %v1887_v38, %v2750_v27  ;;  %v1899_v10 = vadd.f32 %v1891_v45, %v2748_v59  ;;  %v1878_v33 = vmul.f32 %v2059_v14, %v2715_v37 }
 0x3e3   :  { %v1882_v8 = vmul.f32 %v2059_v14, %v2718_v11  ;;  %v2061_v5 = vpop.eup %2060 }
 0x3e4   :  { %1904 = vst [vmem:[#allocation3 + $0x50] sm:$0xff] %v1895_v61  ;;  %1908 = vst [vmem:[#allocation3 + $0x70] sm:$0xff] %v1899_v10  ;;  %v1886_v44 = vmul.f32 %v1878_v33, %v2740_v20  ;;  %v1880_v0 = vmul.f32 %v2061_v5, %v2729_v16  ;;  %v1884_v53 = vmul.f32 %v2061_v5, %v2732_v2 }
 0x3e5   :  { %v1890_v30 = vmul.f32 %v1882_v8, %v2738_v55 }
 0x3e6   :  { %v1894_v60 = vadd.f32 %v1886_v44, %v2750_v27  ;;  %v1888_v37 = vmul.f32 %v1880_v0, %v2740_v20  ;;  %v1892_v11 = vmul.f32 %v1884_v53, %v2738_v55 }
 0x3e7   :  { %v1898_v24 = vadd.f32 %v1890_v30, %v2748_v59 }
 0x3e8   :  { %1903 = vst [vmem:[#allocation3 + $0x48] sm:$0xff] %v1894_v60  ;;  %v1896_v31 = vadd.f32 %v1888_v37, %v2750_v27  ;;  %v1900_v23 = vadd.f32 %v1892_v11, %v2748_v59 }
 0x3e9   :  { %1907 = vst [vmem:[#allocation3 + $0x68] sm:$0xff] %v1898_v24 }
 0x3ea   :  { %1905 = vst [vmem:[#allocation3 + $0x58] sm:$0xff] %v1896_v31  ;;  %1909 = vst [vmem:[#allocation3 + $0x78] sm:$0xff] %v1900_v23 }
 0x3eb   :  { %2073 = shalt.err (!%p2070_p4)
}
 0x3ec   :  { %s2086_s11 = smov 512   ;;  %s2087_s12 = smov 32  }
 0x3ed   :  { %1921 = dma.vmem_to_hbm [thread:$0]  %s1916_s30, 2048, %s2806_s9, [#allocation4], %s2086_s11, %s2086_s11, %s2087_s12  }
 0x3ee   :  { %2082 = dma.done.wait [#allocation4], 2048  }
 0x3ef   :  { %2083 = vsyncadd [#allocation4], 4294965248 }
 0x3f0   :  { %1925 = vsyncpa [#allocation4], 1 }

</bundles_post_ra>
